<compile_context>
chip_gen: v6e
topology: v6e:2x2x1
jax: 0.10.0
libtpu: 0.0.40
codegen_flags: <defaults>
</compile_context>

<pallas_src>
import jax
import jax.numpy as jnp
from jax.experimental import pallas as pl
from jax.experimental.pallas import tpu as pltpu


def _round_up(n, m):
    return ((n + m - 1) // m) * m


def _num_batch_tiles_default():
    """v7x has 2 TensorCores per chip (shard batch); v5e/v6e have 1 (one big step)."""
    try:
        kind = jax.devices()[0].device_kind.lower()
        if "v7" in kind:
            return 2
    except Exception:
        pass
    return 1


def mlp_kernel(x_ref, w0_ref, w1_ref, w2_ref, b_ref, o_ref):
    """Fused fc0 -> ReLU -> fc1 -> ReLU -> fc2 -> L2-normalize on one batch tile."""
    hid_pad = w1_ref.shape[0]
    out_pad = w2_ref.shape[1]

    bias = b_ref[...]                      # (3, bias_pad) f32, loaded once
    b0 = bias[0:1, :hid_pad]
    b1 = bias[1:2, :hid_pad]
    b2 = bias[2:3, :out_pad]

    wdt = w0_ref.dtype                     # MXU input dtype (bf16 fast path / f32 exact)
    x = x_ref[...]                         # (tile_b, in_pad)

    # fc0 + ReLU (MXU matmul, f32 accumulation, f32 elementwise epilogue)
    h = jnp.dot(x, w0_ref[...], preferred_element_type=jnp.float32) + b0
    h = jnp.maximum(h, 0.0)

    # fc1 + ReLU
    h = jnp.dot(h.astype(wdt), w1_ref[...], preferred_element_type=jnp.float32) + b1
    h = jnp.maximum(h, 0.0)

    # fc2
    h = jnp.dot(h.astype(wdt), w2_ref[...], preferred_element_type=jnp.float32) + b2

    # x / (||x||_2 + 0.001) along the last dim. Padded hidden/output lanes are exactly
    # zero (weights/bias are zero-padded), so they do not perturb the norm.
    # Reciprocal goes to the otherwise-idle EUP slot.
    nrm = jnp.sqrt(jnp.sum(h * h, axis=-1, keepdims=True))
    inv = pl.reciprocal(nrm + 0.001, approx=True)
    o_ref[...] = (h * inv).astype(o_ref.dtype)


def make_mlp_forward(w0, b0, w1, b1, w2, b2, *,
                     compute_dtype=jnp.bfloat16, out_dtype=None,
                     num_batch_tiles=None, max_tile_b=1024):
    """Pads feature dims to 128 lanes and casts the weights ONCE (hoisted out of the
    per-call path), then returns a jitted forward fn(x: (B, in)) -> (B, out)."""
    if out_dtype is None:
        out_dtype = compute_dtype
    if num_batch_tiles is None:
        num_batch_tiles = _num_batch_tiles_default()

    in_size, hid = w0.shape
    out_size = w2.shape[1]
    in_pad = _round_up(in_size, 128)
    hid_pad = _round_up(hid, 128)
    out_pad = _round_up(out_size, 128)
    bias_pad = max(hid_pad, out_pad)

    # ---- one-time (per model) weight/bias padding + cast; reused on every call ----
    w0p = jnp.pad(jnp.asarray(w0).astype(compute_dtype),
                  ((0, in_pad - in_size), (0, hid_pad - hid)))
    w1p = jnp.pad(jnp.asarray(w1).astype(compute_dtype),
                  ((0, hid_pad - hid), (0, hid_pad - hid)))
    w2p = jnp.pad(jnp.asarray(w2).astype(compute_dtype),
                  ((0, hid_pad - hid), (0, out_pad - out_size)))
    b0f = jnp.pad(jnp.reshape(b0, (-1,)).astype(jnp.float32), (0, bias_pad - hid))
    b1f = jnp.pad(jnp.reshape(b1, (-1,)).astype(jnp.float32), (0, bias_pad - hid))
    b2f = jnp.pad(jnp.reshape(b2, (-1,)).astype(jnp.float32), (0, bias_pad - out_size))
    bias = jnp.stack([b0f, b1f, b2f], axis=0)          # (3, bias_pad) f32, one DMA

    weight_bytes = (w0p.size * w0p.dtype.itemsize + w1p.size * w1p.dtype.itemsize
                    + w2p.size * w2p.dtype.itemsize + bias.size * bias.dtype.itemsize)

    @jax.jit
    def forward(x):
        B = x.shape[0]
        assert x.shape[1] == in_size
        # Batch tiling, in multiples of 16 rows: one full-batch step on single-TC
        # chips (v5e/v6e), two equal tiles on v7x megacore. Tiny ragged batches
        # collapse to a single 16-row tile (splitting them gains no wall-clock).
        b16 = _round_up(B, 16)
        tile_b = _round_up(pl.cdiv(b16, num_batch_tiles), 16)
        tile_b = min(tile_b, max_tile_b)
        b_pad = _round_up(b16, tile_b)
        n_tiles = b_pad // tile_b

        # Pad + cast x; allow_input_fusion (below) lets XLA fuse this producer into
        # the pallas input DMA so the padded activation never round-trips HBM.
        xp = jnp.pad(x.astype(compute_dtype), ((0, b_pad - B), (0, in_pad - in_size)))

        flops = 2 * b_pad * (in_pad * hid_pad + hid_pad * hid_pad + hid_pad * out_pad)
        bytes_accessed = (xp.size * xp.dtype.itemsize + weight_bytes
                          + b_pad * out_pad * jnp.dtype(out_dtype).itemsize)
        cost = pl.CostEstimate(flops=flops, transcendentals=2 * b_pad,
                               bytes_accessed=bytes_accessed)

        # Resident weight blocks total <0.2 MiB here, so default double-buffering is
        # harmless on all generations; if hidden sizes grow toward v7x's 64 MiB VMEM,
        # switch these constant-index specs to pl.Buffered(1) or tile the K/N dims.
        out_padded = pl.pallas_call(
            mlp_kernel,
            out_shape=jax.ShapeDtypeStruct((b_pad, out_pad), out_dtype),
            grid_spec=pl.GridSpec(
                grid=(n_tiles,),
                in_specs=[
                    pl.BlockSpec((tile_b, in_pad), lambda i: (i, 0)),    # x tile
                    pl.BlockSpec((in_pad, hid_pad), lambda i: (0, 0)),   # W0 (resident)
                    pl.BlockSpec((hid_pad, hid_pad), lambda i: (0, 0)),  # W1 (resident)
                    pl.BlockSpec((hid_pad, out_pad), lambda i: (0, 0)),  # W2 (resident)
                    pl.BlockSpec((3, bias_pad), lambda i: (0, 0)),       # fused biases
                ],
                out_specs=pl.BlockSpec((tile_b, out_pad), lambda i: (i, 0)),
            ),
            compiler_params=pltpu.CompilerParams(
                dimension_semantics=("parallel",),  # batch grid axis shards across TCs (v7x)
                allow_input_fusion=[True, False, False, False, False],
            ),
            cost_estimate=cost,
        )(xp, w0p, w1p, w2p, bias)

        return out_padded[:B, :out_size]

    return forward


def init_linear(key, in_features, out_features):
    """Deterministic init mimicking torch.nn.Linear default (uniform +-1/sqrt(in))."""
    kw, kb = jax.random.split(key)
    bound = 1.0 / jnp.sqrt(jnp.float32(in_features))
    # Stored as (in, out) so the kernel computes x @ W.
    w = jax.random.uniform(kw, (in_features, out_features), jnp.float32, -bound, bound)
    b = jax.random.uniform(kb, (out_features,), jnp.float32, -bound, bound)
    return w, b


def mlp_reference(x, w0, b0, w1, b1, w2, b2):
    h = jnp.maximum(x @ w0 + b0, 0.0)
    h = jnp.maximum(h @ w1 + b1, 0.0)
    h = h @ w2 + b2
    nrm = jnp.sqrt(jnp.sum(h * h, axis=-1, keepdims=True))
    return h / (nrm + 0.001)


if __name__ == "__main__":
    key = jax.random.PRNGKey(0)
    k_x, k0, k1, k2 = jax.random.split(key, 4)

    batch = 256          # v7x: two 128-row tiles (both TCs busy); v5e/v6e: one 256-row step
    input_size = 32
    hidden_size = 32
    output_size = 16

    x = jax.random.normal(k_x, (batch, input_size), jnp.float32)
    w0, b0 = init_linear(k0, input_size, hidden_size)
    w1, b1 = init_linear(k1, hidden_size, hidden_size)
    w2, b2 = init_linear(k2, hidden_size, output_size)

    ref = mlp_reference(x, w0, b0, w1, b1, w2, b2)

    # Exact path (f32 MXU inputs, f32 output): only approx-reciprocal error vs. reference.
    fwd_f32 = make_mlp_forward(w0, b0, w1, b1, w2, b2,
                               compute_dtype=jnp.float32, out_dtype=jnp.float32)
    out_f32 = jax.block_until_ready(fwd_f32(x))
    assert out_f32.shape == (batch, output_size)
    assert jnp.allclose(out_f32, ref, atol=1e-2, rtol=1e-2)

    # Fast path (bf16 MXU inputs + bf16 output): weights padded/cast once and reused.
    fwd_bf16 = make_mlp_forward(w0, b0, w1, b1, w2, b2)
    out_bf16 = jax.block_until_ready(fwd_bf16(x))
    assert out_bf16.shape == (batch, output_size)
    assert out_bf16.dtype == jnp.bfloat16
    assert jnp.allclose(out_bf16.astype(jnp.float32), ref, atol=3e-2, rtol=3e-2)

    # Second call: same prepared weights, same compiled executable (no re-pad/re-cast).
    out_bf16_2 = jax.block_until_ready(fwd_bf16(x))
    assert jnp.allclose(out_bf16_2.astype(jnp.float32), ref, atol=3e-2, rtol=3e-2)

    # Ragged batch: exercises 16-row batch padding + slice-back.
    out_ragged = jax.block_until_ready(fwd_bf16(x[:5]))
    assert out_ragged.shape == (5, output_size)
    assert jnp.allclose(out_ragged.astype(jnp.float32), ref[:5], atol=3e-2, rtol=3e-2)

    print("KERNEL_OK")
</pallas_src>

<mosaic_0001>
module attributes {stable_mosaic.version = 11 : i64} {
  func.func @mlp_kernel(%arg0: i32, %arg1: memref<256x128xf32, #tpu.memory_space<vmem>>, %arg2: memref<128x128xf32, #tpu.memory_space<vmem>>, %arg3: memref<128x128xf32, #tpu.memory_space<vmem>>, %arg4: memref<128x128xf32, #tpu.memory_space<vmem>>, %arg5: memref<3x128xf32, #tpu.memory_space<vmem>>, %arg6: memref<256x128xf32, #tpu.memory_space<vmem>>) attributes {dimension_semantics = [#tpu.dimension_semantics<parallel>], iteration_bounds = array<i64: 1>, scalar_prefetch = 0 : i64, scratch_operands = 0 : i64, tpu.core_type = #tpu.core_type<tc>, window_params = [{transform_indices = @transform_0, window_bounds = array<i64: 256, 128>}, {pipeline_mode = #tpu.pipeline_mode<synchronous>, transform_indices = @transform_1, window_bounds = array<i64: 128, 128>}, {pipeline_mode = #tpu.pipeline_mode<synchronous>, transform_indices = @transform_2, window_bounds = array<i64: 128, 128>}, {pipeline_mode = #tpu.pipeline_mode<synchronous>, transform_indices = @transform_3, window_bounds = array<i64: 128, 128>}, {pipeline_mode = #tpu.pipeline_mode<synchronous>, transform_indices = @transform_4, window_bounds = array<i64: 3, 128>}, {transform_indices = @transform_5, window_bounds = array<i64: 256, 128>}]} {
    %c0 = arith.constant 0 : index
    %c0_0 = arith.constant 0 : index
    %0 = vector.load %arg5[%c0, %c0_0] : memref<3x128xf32, #tpu.memory_space<vmem>>, vector<3x128xf32>
    %1 = vector.extract_strided_slice %0 {offsets = [0, 0], sizes = [1, 128], strides = [1, 1]} : vector<3x128xf32> to vector<1x128xf32>
    %2 = vector.extract_strided_slice %0 {offsets = [1, 0], sizes = [1, 128], strides = [1, 1]} : vector<3x128xf32> to vector<1x128xf32>
    %3 = vector.extract_strided_slice %0 {offsets = [2, 0], sizes = [1, 128], strides = [1, 1]} : vector<3x128xf32> to vector<1x128xf32>
    %c0_1 = arith.constant 0 : index
    %c0_2 = arith.constant 0 : index
    %4 = vector.load %arg1[%c0_1, %c0_2] : memref<256x128xf32, #tpu.memory_space<vmem>>, vector<256x128xf32>
    %c0_3 = arith.constant 0 : index
    %c0_4 = arith.constant 0 : index
    %5 = vector.load %arg2[%c0_3, %c0_4] : memref<128x128xf32, #tpu.memory_space<vmem>>, vector<128x128xf32>
    %cst = arith.constant dense<0.000000e+00> : vector<256x128xf32>
    %6 = tpu.matmul %4, %5, %cst {dimension_numbers = #tpu.dot_dimension_numbers<[1], [0], [0], [1], [0, 0, 1, 1], [], []>} : vector<256x128xf32>, vector<128x128xf32>, vector<256x128xf32> -> vector<256x128xf32>
    %7 = vector.broadcast %1 : vector<1x128xf32> to vector<256x128xf32>
    %8 = arith.addf %6, %7 : vector<256x128xf32>
    %cst_5 = arith.constant 0.000000e+00 : f32
    %9 = vector.broadcast %cst_5 : f32 to vector<256x128xf32>
    %10 = arith.maximumf %8, %9 : vector<256x128xf32>
    %c0_6 = arith.constant 0 : index
    %c0_7 = arith.constant 0 : index
    %11 = vector.load %arg3[%c0_6, %c0_7] : memref<128x128xf32, #tpu.memory_space<vmem>>, vector<128x128xf32>
    %cst_8 = arith.constant dense<0.000000e+00> : vector<256x128xf32>
    %12 = tpu.matmul %10, %11, %cst_8 {dimension_numbers = #tpu.dot_dimension_numbers<[1], [0], [0], [1], [0, 0, 1, 1], [], []>} : vector<256x128xf32>, vector<128x128xf32>, vector<256x128xf32> -> vector<256x128xf32>
    %13 = vector.broadcast %2 : vector<1x128xf32> to vector<256x128xf32>
    %14 = arith.addf %12, %13 : vector<256x128xf32>
    %cst_9 = arith.constant 0.000000e+00 : f32
    %15 = vector.broadcast %cst_9 : f32 to vector<256x128xf32>
    %16 = arith.maximumf %14, %15 : vector<256x128xf32>
    %c0_10 = arith.constant 0 : index
    %c0_11 = arith.constant 0 : index
    %17 = vector.load %arg4[%c0_10, %c0_11] : memref<128x128xf32, #tpu.memory_space<vmem>>, vector<128x128xf32>
    %cst_12 = arith.constant dense<0.000000e+00> : vector<256x128xf32>
    %18 = tpu.matmul %16, %17, %cst_12 {dimension_numbers = #tpu.dot_dimension_numbers<[1], [0], [0], [1], [0, 0, 1, 1], [], []>} : vector<256x128xf32>, vector<128x128xf32>, vector<256x128xf32> -> vector<256x128xf32>
    %19 = vector.broadcast %3 : vector<1x128xf32> to vector<256x128xf32>
    %20 = arith.addf %18, %19 : vector<256x128xf32>
    %21 = arith.mulf %20, %20 : vector<256x128xf32>
    %cst_13 = arith.constant dense<0.000000e+00> : vector<256xf32>
    %22 = vector.multi_reduction <add>, %21, %cst_13 [1] : vector<256x128xf32> to vector<256xf32>
    %23 = vector.shape_cast %22 : vector<256xf32> to vector<256x1xf32>
    %24 = math.sqrt %23 : vector<256x1xf32>
    %cst_14 = arith.constant 1.000000e-03 : f32
    %25 = vector.broadcast %cst_14 : f32 to vector<256x1xf32>
    %26 = arith.addf %24, %25 : vector<256x1xf32>
    %27 = tpu.reciprocal %26 {approx = true} : vector<256x1xf32> -> vector<256x1xf32>
    %28 = vector.broadcast %27 : vector<256x1xf32> to vector<256x128xf32>
    %29 = arith.mulf %20, %28 : vector<256x128xf32>
    %c0_15 = arith.constant 0 : index
    %c0_16 = arith.constant 0 : index
    %30 = vector.load %arg6[%c0_15, %c0_16] : memref<256x128xf32, #tpu.memory_space<vmem>>, vector<256x128xf32>
    tpu.vector_store %arg6[%c0_15, %c0_16], %29 {strides = array<i32>} : memref<256x128xf32, #tpu.memory_space<vmem>>, vector<256x128xf32>,
    return
  }
  func.func @transform_0(%arg0: i32) -> (i32, i32) {
    %c0_i32 = arith.constant 0 : i32
    %c0_i32_0 = arith.constant 0 : i32
    return %arg0, %c0_i32 : i32, i32
  }
  func.func @transform_1(%arg0: i32) -> (i32, i32) {
    %c0_i32 = arith.constant 0 : i32
    %c0_i32_0 = arith.constant 0 : i32
    %c0_i32_1 = arith.constant 0 : i32
    return %c0_i32, %c0_i32_0 : i32, i32
  }
  func.func @transform_2(%arg0: i32) -> (i32, i32) {
    %c0_i32 = arith.constant 0 : i32
    %c0_i32_0 = arith.constant 0 : i32
    %c0_i32_1 = arith.constant 0 : i32
    return %c0_i32, %c0_i32_0 : i32, i32
  }
  func.func @transform_3(%arg0: i32) -> (i32, i32) {
    %c0_i32 = arith.constant 0 : i32
    %c0_i32_0 = arith.constant 0 : i32
    %c0_i32_1 = arith.constant 0 : i32
    return %c0_i32, %c0_i32_0 : i32, i32
  }
  func.func @transform_4(%arg0: i32) -> (i32, i32) {
    %c0_i32 = arith.constant 0 : i32
    %c0_i32_0 = arith.constant 0 : i32
    %c0_i32_1 = arith.constant 0 : i32
    return %c0_i32, %c0_i32_0 : i32, i32
  }
  func.func @transform_5(%arg0: i32) -> (i32, i32) {
    %c0_i32 = arith.constant 0 : i32
    %c0_i32_0 = arith.constant 0 : i32
    return %arg0, %c0_i32 : i32, i32
  }
}

</mosaic_0001>

<bundles_post_ra>
// kernel: forward.2
= control target key start
LH: loop header
LB: loop body
LE: loop exit
PB: predicated region body
PF: predicated region fallthrough
CT: control target
= control target key end

     0   :  { %s3296_s0 = inlined_call_operand.hbm [shape: f32[128,128], index: 0, kind: input, shape index: {}]   ;;  %s3297_s1 = inlined_call_operand.vmem [shape: f32[128,128], index: 1, kind: input, shape index: {}]   ;;  %s3298_s2 = inlined_call_operand.vmem [shape: f32[128,128], index: 2, kind: input, shape index: {}]   ;;  %s3299_s3 = inlined_call_operand.vmem [shape: f32[3,128], index: 3, kind: input, shape index: {}]   ;;  %s3300_s4 = inlined_call_operand.vmem [shape: f32[256,32], index: 4, kind: input, shape index: {}]   ;;  %s3301_s5 = inlined_call_operand.<no memory space> [shape: f32[], index: 5, kind: input, shape index: {}]   ;;  %s3302_s6 = inlined_call_operand.vmem [shape: f32[256,128], index: 6, kind: output, shape index: {}]  }
   0x1   :  { %v2312_v0 = vstv %s3301_s5 }
   0x2   :  { %12 = vsyncpa [#allocation8], 0  ;;  %s2271_s23 = smov [#allocation7]  }
   0x3   :  { %s20_s24 = sshll.u32 %s2271_s23, 4  ;;  %s21_s24 = int_to_ptr.vmem [resolvable:$true] %s20_s24 }
   0x4   :  { %s2257_s25 = scalar_lea.vmem %s21_s24, 2048  ;;  %p2262_p1 = scmp.lt.s32.totalorder %s21_s24, %s21_s24 }
   0x5   :  { %p2258_p0 = scmp.ne.s32.totalorder %s21_s24, %s2257_s25  ;;  %p2263_p2 = scmp.lt.s32.totalorder %s2257_s25, %s2257_s25 }
   0x7   :  { %p2264_p3 = por %p2263_p2, %p2262_p1 }
   0x9   :  { %p2265_p4 = pnand %p2264_p3, %p2258_p0 }
   0xb   :  { %2268 = shalt.err (!%p2265_p4)
}
   0xc   :  { %s2272_s26 = smov 128   ;;  %s2273_s27 = smov 8  }
   0xd   :  { %26 = dma.hbm_to_vmem [thread:$0]  %s3296_s0, 2048, %s21_s24, [#allocation8], %s2272_s26, %s2272_s26, %s2273_s27  }
   0xe   :  { %2269 = dma.done.wait [#allocation8], 2048  }
   0xf   :  { %2270 = vsyncadd [#allocation8], 4294965248  ;;  %v37_v1 = vlaneseq  ;;  %v434_v3 = vld [vmem:[#allocation7 + $0x78] sm:$0xff]  ;;  %v433_v4 = vld [vmem:[#allocation7 + $0x70] sm:$0xff] }
  0x10   :  { %1846 = vmatprep.subr.mxu0 %v434_v3  ;;  %2086 = vmatprep.subr.mxu1 %v434_v3  ;;  %v432_v6 = vld [vmem:[#allocation7 + $0x68] sm:$0xff]  ;;  %v431_v9 = vld [vmem:[#allocation7 + $0x60] sm:$0xff]  ;;  %v430_v12 = vld [vmem:[#allocation7 + $0x58] sm:$0xff] }
  0x11   :  { %v2317_v2 = vand.u32 127, %v37_v1  ;;  %v2319_v5 = vshrl.u32 %v37_v1, 7  ;;  %1847 = vmatpush3.msra.mxu0 %v434_v3  ;;  %2102 = vmatpush3.msra.mxu1 %v434_v3  ;;  %v36_v10 = vld [vmem:[%s3300_s4] sm:$0xff]  ;;  %v429_v16 = vld [vmem:[#allocation7 + $0x50] sm:$0xff]  ;;  %v428_v17 = vld [vmem:[#allocation7 + $0x48] sm:$0xff] }
  0x12   :  { %1848 = vmatprep.subr.mxu0 %v433_v4  ;;  %2087 = vmatprep.subr.mxu1 %v433_v4  ;;  %v2330_v11 = vld [vmem:[%s3299_s3] sm:$0x7]  ;;  %v426_v19 = vld [vmem:[#allocation7 + $0x38] sm:$0xff]  ;;  %v425_v20 = vld [vmem:[#allocation7 + $0x30] sm:$0xff] }
  0x13   :  { %v714_v7 = vsub.s32 1, %v2319_v5  ;;  %v991_v8 = vsub.s32 2, %v2319_v5  ;;  %vm40_vm0 = vcmp.lt.s32.totalorder %v2317_v2, 32  ;;  %1849 = vmatpush3.msra.mxu0 %v433_v4  ;;  %2103 = vmatpush3.msra.mxu1 %v433_v4  ;;  %v427_v18 = vld [vmem:[#allocation7 + $0x40] sm:$0xff]  ;;  %v424_v21 = vld [vmem:[#allocation7 + $0x28] sm:$0xff]  ;;  %v422_v23 = vld [vmem:[#allocation7 + $0x18] sm:$0xff] }
  0x14   :  { %1850 = vmatprep.subr.mxu0 %v432_v6  ;;  %2088 = vmatprep.subr.mxu1 %v432_v6  ;;  %v41_v13 = vsel %vm40_vm0, %v36_v10, %v2312_v0  ;;  %v423_v22 = vld [vmem:[#allocation7 + $0x20] sm:$0xff]  ;;  %v421_v24 = vld [vmem:[#allocation7 + $0x10] sm:$0xff]  ;;  %v420_v25 = vld [vmem:[#allocation7 + $0x8] sm:$0xff] }
  0x15   :  { %1851 = vmatpush3.msra.mxu0 %v432_v6  ;;  %v2336_v14 = vrot.slane %v2330_v11, %v714_v7  ;;  %v2339_v15 = vrot.slane %v2330_v11, %v991_v8  ;;  %1878 = vmatprep.mubr.f32.mxu0 %v41_v13  ;;  %v1671_v26 = vld [vmem:[%s3300_s4 + $0x8] sm:$0xff]  ;;  %v419_v27 = vld [vmem:[#allocation7] sm:$0xff]  ;;  %v1672_v28 = vld [vmem:[%s3300_s4 + $0x10] sm:$0xff] }
  0x16   :  { %1852 = vmatprep.subr.mxu0 %v431_v9  ;;  %2104 = vmatpush3.msra.mxu1 %v432_v6  ;;  %v1686_v29 = vld [vmem:[%s3300_s4 + $0x80] sm:$0xff]  ;;  %v51_v30 = vsel %vm40_vm0, %v1671_v26, %v2312_v0  ;;  %v1687_v31 = vld [vmem:[%s3300_s4 + $0x88] sm:$0xff]  ;;  %v62_v32 = vsel %vm40_vm0, %v1672_v28, %v2312_v0  ;;  %v1673_v33 = vld [vmem:[%s3300_s4 + $0x18] sm:$0xff] }
  0x17   :  { %1853 = vmatpush3.msra.mxu0 %v431_v9  ;;  %2089 = vmatprep.subr.mxu1 %v431_v9  ;;  %v1688_v34 = vld [vmem:[%s3300_s4 + $0x90] sm:$0xff]  ;;  %v1674_v35 = vld [vmem:[%s3300_s4 + $0x20] sm:$0xff]  ;;  %v216_v36 = vsel %vm40_vm0, %v1686_v29, %v2312_v0  ;;  %v711_v37 = vld [vmem:[%s3297_s1 + $0x78] sm:$0xff]  ;;  %v227_v38 = vsel %vm40_vm0, %v1687_v31, %v2312_v0  ;;  %v73_v39 = vsel %vm40_vm0, %v1673_v33, %v2312_v0 }
  0x18   :  { %1854 = vmatprep.subr.mxu0 %v430_v12  ;;  %2105 = vmatpush3.msra.mxu1 %v431_v9  ;;  %v238_v40 = vsel %vm40_vm0, %v1688_v34, %v2312_v0  ;;  %v1689_v41 = vld [vmem:[%s3300_s4 + $0x98] sm:$0xff]  ;;  %v84_v42 = vsel %vm40_vm0, %v1674_v35, %v2312_v0  ;;  %v1675_v43 = vld [vmem:[%s3300_s4 + $0x28] sm:$0xff]  ;;  %v1690_v44 = vld [vmem:[%s3300_s4 + $0xa0] sm:$0xff] }
  0x19   :  { %1855 = vmatpush3.msra.mxu0 %v430_v12  ;;  %2090 = vmatprep.subr.mxu1 %v430_v12  ;;  %v1676_v45 = vld [vmem:[%s3300_s4 + $0x30] sm:$0xff]  ;;  %v249_v47 = vsel %vm40_vm0, %v1689_v41, %v2312_v0  ;;  %v95_v48 = vsel %vm40_vm0, %v1675_v43, %v2312_v0  ;;  %v260_v49 = vsel %vm40_vm0, %v1690_v44, %v2312_v0  ;;  %v1691_v50 = vld [vmem:[%s3300_s4 + $0xa8] sm:$0xff]  ;;  %v1677_v52 = vld [vmem:[%s3300_s4 + $0x38] sm:$0xff] }
  0x1a   :  { %1856 = vmatprep.subr.mxu0 %v429_v16  ;;  %2106 = vmatpush3.msra.mxu1 %v430_v12  ;;  %v710_v46 = vld [vmem:[%s3297_s1 + $0x70] sm:$0xff]  ;;  %v106_v51 = vsel %vm40_vm0, %v1676_v45, %v2312_v0  ;;  %v1678_v54 = vld [vmem:[%s3300_s4 + $0x40] sm:$0xff]  ;;  %v709_v55 = vld [vmem:[%s3297_s1 + $0x68] sm:$0xff]  ;;  %v271_v56 = vsel %vm40_vm0, %v1691_v50, %v2312_v0  ;;  %v117_v57 = vsel %vm40_vm0, %v1677_v52, %v2312_v0 }
  0x1b   :  { %1857 = vmatpush3.msra.mxu0 %v429_v16  ;;  %2091 = vmatprep.subr.mxu1 %v429_v16  ;;  %v1692_v53 = vld [vmem:[%s3300_s4 + $0xb0] sm:$0xff]  ;;  %v1693_v59 = vld [vmem:[%s3300_s4 + $0xb8] sm:$0xff]  ;;  %v128_v60 = vsel %vm40_vm0, %v1678_v54, %v2312_v0  ;;  %v1679_v61 = vld [vmem:[%s3300_s4 + $0x48] sm:$0xff] }
  0x1c   :  { %1858 = vmatprep.subr.mxu0 %v428_v17  ;;  %2107 = vmatpush3.msra.mxu1 %v429_v16  ;;  %v282_v58 = vsel %vm40_vm0, %v1692_v53, %v2312_v0  ;;  %v1694_v62 = vld [vmem:[%s3300_s4 + $0xc0] sm:$0xff]  ;;  %v1680_v63 = vld [vmem:[%s3300_s4 + $0x50] sm:$0xff]  ;;  %v293_v3 = vsel %vm40_vm0, %v1693_v59, %v2312_v0  ;;  %v139_v4 = vsel %vm40_vm0, %v1679_v61, %v2312_v0  ;;  %v1695_v7 = vld [vmem:[%s3300_s4 + $0xc8] sm:$0xff] }
  0x1d   :  { %1859 = vmatpush3.msra.mxu0 %v428_v17  ;;  %2092 = vmatprep.subr.mxu1 %v428_v17  ;;  %v708_v1 = vld [vmem:[%s3297_s1 + $0x60] sm:$0xff]  ;;  %v304_v6 = vsel %vm40_vm0, %v1694_v62, %v2312_v0  ;;  %v150_v8 = vsel %vm40_vm0, %v1680_v63, %v2312_v0  ;;  %v1681_v9 = vld [vmem:[%s3300_s4 + $0x58] sm:$0xff]  ;;  %v1696_v10 = vld [vmem:[%s3300_s4 + $0xd0] sm:$0xff]  ;;  %v315_v16 = vsel %vm40_vm0, %v1695_v7, %v2312_v0 }
  0x1e   :  { %1860 = vmatprep.subr.mxu0 %v427_v18  ;;  %2108 = vmatpush3.msra.mxu1 %v428_v17  ;;  %v1682_v12 = vld [vmem:[%s3300_s4 + $0x60] sm:$0xff]  ;;  %v707_v13 = vld [vmem:[%s3297_s1 + $0x58] sm:$0xff]  ;;  %v161_v17 = vsel %vm40_vm0, %v1681_v9, %v2312_v0  ;;  %v1699_v28 = vld [vmem:[%s3300_s4 + $0xe8] sm:$0xff] }
  0x1f   :  { %1861 = vmatpush3.msra.mxu0 %v427_v18  ;;  %2093 = vmatprep.subr.mxu1 %v427_v18  ;;  %v1700_v31 = vld [vmem:[%s3300_s4 + $0xf0] sm:$0xff]  ;;  %v359_v33 = vsel %vm40_vm0, %v1699_v28, %v2312_v0  ;;  %v701_v41 = vld [vmem:[%s3297_s1 + $0x28] sm:$0xff]  ;;  %v699_v2 = vld [vmem:[%s3297_s1 + $0x18] sm:$0xff] }
  0x20   :  { %1862 = vmatprep.subr.mxu0 %v426_v19  ;;  %2109 = vmatpush3.msra.mxu1 %v427_v18  ;;  %v326_v18 = vsel %vm40_vm0, %v1696_v10, %v2312_v0  ;;  %v370_v35 = vsel %vm40_vm0, %v1700_v31, %v2312_v0  ;;  %v697_v43 = vld [vmem:[%s3297_s1 + $0x8] sm:$0xff]  ;;  %v696_v44 = vld [vmem:[%s3297_s1] sm:$0xff]  ;;  %v988_v45 = vld [vmem:[%s3298_s2 + $0x78] sm:$0xff] }
  0x21   :  { %1863 = vmatpush3.msra.mxu0 %v426_v19  ;;  %2094 = vmatprep.subr.mxu1 %v426_v19  ;;  %v983_v50 = vld [vmem:[%s3298_s2 + $0x50] sm:$0xff]  ;;  %v981_v52 = vld [vmem:[%s3298_s2 + $0x40] sm:$0xff]  ;;  %v980_v53 = vld [vmem:[%s3298_s2 + $0x38] sm:$0xff] }
  0x22   :  { %1864 = vmatprep.subr.mxu0 %v425_v20  ;;  %2110 = vmatpush3.msra.mxu1 %v426_v19  ;;  %v1697_v19 = vld [vmem:[%s3300_s4 + $0xd8] sm:$0xff]  ;;  %v979_v54 = vld [vmem:[%s3298_s2 + $0x30] sm:$0xff] }
  0x23   :  { %1865 = vmatpush3.msra.mxu0 %v425_v20  ;;  %2095 = vmatprep.subr.mxu1 %v425_v20 }
  0x24   :  { %1866 = vmatprep.subr.mxu0 %v424_v21  ;;  %2111 = vmatpush3.msra.mxu1 %v425_v20  ;;  %v172_v20 = vsel %vm40_vm0, %v1682_v12, %v2312_v0 }
  0x25   :  { %1867 = vmatpush3.msra.mxu0 %v424_v21  ;;  %2096 = vmatprep.subr.mxu1 %v424_v21 }
  0x26   :  { %1868 = vmatprep.subr.mxu0 %v423_v22  ;;  %2112 = vmatpush3.msra.mxu1 %v424_v21  ;;  %v1683_v21 = vld [vmem:[%s3300_s4 + $0x68] sm:$0xff] }
  0x27   :  { %1869 = vmatpush3.msra.mxu0 %v423_v22  ;;  %2097 = vmatprep.subr.mxu1 %v423_v22  ;;  %v183_v26 = vsel %vm40_vm0, %v1683_v21, %v2312_v0 }
  0x28   :  { %1870 = vmatprep.subr.mxu0 %v422_v23  ;;  %2113 = vmatpush3.msra.mxu1 %v423_v22  ;;  %v1698_v22 = vld [vmem:[%s3300_s4 + $0xe0] sm:$0xff] }
  0x29   :  { %1871 = vmatpush3.msra.mxu0 %v422_v23  ;;  %2098 = vmatprep.subr.mxu1 %v422_v23 }
  0x2a   :  { %1872 = vmatprep.subr.mxu0 %v421_v24  ;;  %2114 = vmatpush3.msra.mxu1 %v422_v23  ;;  %v1684_v23 = vld [vmem:[%s3300_s4 + $0x70] sm:$0xff] }
  0x2b   :  { %1873 = vmatpush3.msra.mxu0 %v421_v24  ;;  %2099 = vmatprep.subr.mxu1 %v421_v24  ;;  %v194_v29 = vsel %vm40_vm0, %v1684_v23, %v2312_v0 }
  0x2c   :  { %1874 = vmatprep.subr.mxu0 %v420_v25  ;;  %2115 = vmatpush3.msra.mxu1 %v421_v24  ;;  %v706_v24 = vld [vmem:[%s3297_s1 + $0x50] sm:$0xff] }
  0x2d   :  { %1875 = vmatpush3.msra.mxu0 %v420_v25  ;;  %2100 = vmatprep.subr.mxu1 %v420_v25 }
  0x2e   :  { %1876 = vmatprep.subr.mxu0 %v419_v27  ;;  %2116 = vmatpush3.msra.mxu1 %v420_v25  ;;  %v337_v25 = vsel %vm40_vm0, %v1697_v19, %v2312_v0 }
  0x2f   :  { %1877 = vmatpush3.msra.mxu0 %v419_v27  ;;  %2101 = vmatprep.subr.mxu1 %v419_v27 }
  0x30   :  { %1879 = vmatmul.mubr.f32.vlgmr.msra.gmra.mxu0 %v51_v30  ;;  %2117 = vmatpush3.msra.mxu1 %v419_v27  ;;  %v348_v27 = vsel %vm40_vm0, %v1698_v22, %v2312_v0  ;;  %v1685_v30 = vld [vmem:[%s3300_s4 + $0x78] sm:$0xff] }
  0x31   :  { %1881 = vmatprep.mubr.f32.mxu0 %v62_v32  ;;  %1902 = vmatprep.mubr.f32.mxu1 %v216_v36  ;;  %v705_v32 = vld [vmem:[%s3297_s1 + $0x48] sm:$0xff]  ;;  %v205_v34 = vsel %vm40_vm0, %v1685_v30, %v2312_v0  ;;  %v1701_v36 = vld [vmem:[%s3300_s4 + $0xf8] sm:$0xff] }
  0x32   :  { %1926 = vmatprep.subr.mxu1 %v711_v37  ;;  %1903 = vmatmul.mubr.f32.vlgmr.msra.gmra.mxu1 %v227_v38  ;;  %v381_v38 = vsel %vm40_vm0, %v1701_v36, %v2312_v0  ;;  %v700_v0 = vld [vmem:[%s3297_s1 + $0x20] sm:$0xff] }
  0x33   :  { %1905 = vmatprep.mubr.f32.mxu1 %v238_v40  ;;  %1927 = vmatpush3.msra.mxu1 %v711_v37  ;;  %v704_v37 = vld [vmem:[%s3297_s1 + $0x40] sm:$0xff]  ;;  %v702_v40 = vld [vmem:[%s3297_s1 + $0x30] sm:$0xff] }
  0x34   :  { %1882 = vmatmul.mubr.f32.gmra.mxu0 %v73_v39  ;;  %1928 = vmatprep.subr.mxu1 %v710_v46  ;;  %v703_v39 = vld [vmem:[%s3297_s1 + $0x38] sm:$0xff] }
  0x35   :  { %1884 = vmatprep.mubr.f32.mxu0 %v84_v42  ;;  %1929 = vmatpush3.msra.mxu1 %v710_v46  ;;  %v698_v42 = vld [vmem:[%s3297_s1 + $0x10] sm:$0xff] }
  0x36   :  { %1906 = vmatmul.mubr.f32.gmra.mxu1 %v249_v47  ;;  %1930 = vmatprep.subr.mxu1 %v709_v55  ;;  %v987_v46 = vld [vmem:[%s3298_s2 + $0x70] sm:$0xff]  ;;  %v986_v47 = vld [vmem:[%s3298_s2 + $0x68] sm:$0xff] }
  0x37   :  { %1908 = vmatprep.mubr.f32.mxu1 %v260_v49  ;;  %1931 = vmatpush3.msra.mxu1 %v709_v55  ;;  %v984_v49 = vld [vmem:[%s3298_s2 + $0x58] sm:$0xff]  ;;  %v978_v55 = vld [vmem:[%s3298_s2 + $0x28] sm:$0xff] }
  0x38   :  { %1885 = vmatmul.mubr.f32.gmra.mxu0 %v95_v48  ;;  %1932 = vmatprep.subr.mxu1 %v708_v1  ;;  %v985_v48 = vld [vmem:[%s3298_s2 + $0x60] sm:$0xff] }
  0x39   :  { %1887 = vmatprep.mubr.f32.mxu0 %v106_v51  ;;  %1933 = vmatpush3.msra.mxu1 %v708_v1  ;;  %v982_v51 = vld [vmem:[%s3298_s2 + $0x48] sm:$0xff] }
  0x3a   :  { %1909 = vmatmul.mubr.f32.gmra.mxu1 %v271_v56  ;;  %1934 = vmatprep.subr.mxu1 %v707_v13  ;;  %v977_v56 = vld [vmem:[%s3298_s2 + $0x20] sm:$0xff] }
  0x3b   :  { %1911 = vmatprep.mubr.f32.mxu1 %v282_v58  ;;  %1935 = vmatpush3.msra.mxu1 %v707_v13  ;;  %v437_v58 = vsub.s32 0, %v2319_v5 }
  0x3c   :  { %1888 = vmatmul.mubr.f32.gmra.mxu0 %v117_v57  ;;  %1936 = vmatprep.subr.mxu1 %v706_v24  ;;  %v976_v57 = vld [vmem:[%s3298_s2 + $0x18] sm:$0xff] }
  0x3d   :  { %1890 = vmatprep.mubr.f32.mxu0 %v128_v60  ;;  %1937 = vmatpush3.msra.mxu1 %v706_v24  ;;  %v2616_v59 = vrot.slane %v2330_v11, %v437_v58 }
  0x3e   :  { %1912 = vmatmul.mubr.f32.gmra.mxu1 %v293_v3  ;;  %1938 = vmatprep.subr.mxu1 %v705_v32 }
  0x3f   :  { %1914 = vmatprep.mubr.f32.mxu1 %v304_v6  ;;  %1939 = vmatpush3.msra.mxu1 %v705_v32 }
  0x40   :  { %1891 = vmatmul.mubr.f32.gmra.mxu0 %v139_v4  ;;  %1940 = vmatprep.subr.mxu1 %v704_v37 }
  0x41   :  { %1893 = vmatprep.mubr.f32.mxu0 %v150_v8  ;;  %1941 = vmatpush3.msra.mxu1 %v704_v37 }
  0x42   :  { %1915 = vmatmul.mubr.f32.gmra.mxu1 %v315_v16  ;;  %1942 = vmatprep.subr.mxu1 %v703_v39 }
  0x43   :  { %1917 = vmatprep.mubr.f32.mxu1 %v326_v18  ;;  %1943 = vmatpush3.msra.mxu1 %v703_v39 }
  0x44   :  { %1894 = vmatmul.mubr.f32.gmra.mxu0 %v161_v17  ;;  %1944 = vmatprep.subr.mxu1 %v702_v40 }
  0x45   :  { %1896 = vmatprep.mubr.f32.mxu0 %v172_v20  ;;  %1945 = vmatpush3.msra.mxu1 %v702_v40 }
  0x46   :  { %1918 = vmatmul.mubr.f32.gmra.mxu1 %v337_v25  ;;  %1946 = vmatprep.subr.mxu1 %v701_v41 }
  0x47   :  { %1920 = vmatprep.mubr.f32.mxu1 %v348_v27  ;;  %1947 = vmatpush3.msra.mxu1 %v701_v41 }
  0x48   :  { %1897 = vmatmul.mubr.f32.gmra.mxu0 %v183_v26  ;;  %1948 = vmatprep.subr.mxu1 %v700_v0 }
  0x49   :  { %1899 = vmatprep.mubr.f32.mxu0 %v194_v29  ;;  %1949 = vmatpush3.msra.mxu1 %v700_v0 }
  0x4a   :  { %1921 = vmatmul.mubr.f32.gmra.mxu1 %v359_v33  ;;  %1950 = vmatprep.subr.mxu1 %v699_v2 }
  0x4b   :  { %1923 = vmatprep.mubr.f32.mxu1 %v370_v35  ;;  %1951 = vmatpush3.msra.mxu1 %v699_v2 }
  0x4c   :  { %1900 = vmatmul.mubr.f32.gmra.mxu0 %v205_v34  ;;  %1952 = vmatprep.subr.mxu1 %v698_v42 }
  0x4d   :  { %1953 = vmatpush3.msra.mxu1 %v698_v42  ;;  %2006 = vmatprep.subr.mxu0 %v988_v45 }
  0x4e   :  { %1924 = vmatmul.mubr.f32.gmra.mxu1 %v381_v38  ;;  %1954 = vmatprep.subr.mxu1 %v697_v43 }
  0x4f   :  { %1955 = vmatpush3.msra.mxu1 %v697_v43  ;;  %2007 = vmatpush3.msra.mxu0 %v988_v45 }
  0x50   :  { %1956 = vmatprep.subr.mxu1 %v696_v44  ;;  %2008 = vmatprep.subr.mxu0 %v987_v46 }
  0x51   :  { %1957 = vmatpush3.msra.mxu1 %v696_v44  ;;  %2009 = vmatpush3.msra.mxu0 %v987_v46 }
  0x52   :  { %2010 = vmatprep.subr.mxu0 %v986_v47 }
  0x53   :  { %2011 = vmatpush3.msra.mxu0 %v986_v47 }
  0x54   :  { %2012 = vmatprep.subr.mxu0 %v985_v48 }
  0x55   :  { %2013 = vmatpush3.msra.mxu0 %v985_v48 }
  0x56   :  { %2014 = vmatprep.subr.mxu0 %v984_v49 }
  0x57   :  { %2015 = vmatpush3.msra.mxu0 %v984_v49 }
  0x58   :  { %2016 = vmatprep.subr.mxu0 %v983_v50 }
  0x59   :  { %2017 = vmatpush3.msra.mxu0 %v983_v50 }
  0x5a   :  { %2018 = vmatprep.subr.mxu0 %v982_v51 }
  0x5b   :  { %2019 = vmatpush3.msra.mxu0 %v982_v51 }
  0x5c   :  { %2020 = vmatprep.subr.mxu0 %v981_v52 }
  0x5d   :  { %2021 = vmatpush3.msra.mxu0 %v981_v52 }
  0x5e   :  { %2022 = vmatprep.subr.mxu0 %v980_v53 }
  0x5f   :  { %2023 = vmatpush3.msra.mxu0 %v980_v53 }
  0x60   :  { %2024 = vmatprep.subr.mxu0 %v979_v54 }
  0x61   :  { %2025 = vmatpush3.msra.mxu0 %v979_v54 }
  0x62   :  { %2026 = vmatprep.subr.mxu0 %v978_v55 }
  0x63   :  { %2027 = vmatpush3.msra.mxu0 %v978_v55 }
  0x64   :  { %2028 = vmatprep.subr.mxu0 %v977_v56 }
  0x65   :  { %2029 = vmatpush3.msra.mxu0 %v977_v56 }
  0x66   :  { %2030 = vmatprep.subr.mxu0 %v976_v57 }
  0x67   :  { %2031 = vmatpush3.msra.mxu0 %v976_v57 }
  0xf0   :  { %v1880_v60 = vpop.f32.mrf.mxu0 }
  0xf1   :  { %v511_v61 = vadd.f32 %v1880_v60, %v2616_v59 }
  0xf2   :  { %v505_v62 = vpop.f32.mrf.mxu0  ;;  %v2620_v1 = vpop.f32.mrf.mxu1 }
  0xf3   :  { %v506_v63 = vadd.f32 %v505_v62, %v2616_v59  ;;  %v665_v7 = vmax.f32 %v511_v61, 0.0  ;;  %v591_v56 = vadd.f32 %v2620_v1, %v2616_v59 }
  0xf4   :  { %v1883_v3 = vpop.f32.mrf.mxu0  ;;  %v585_v6 = vpop.f32.mrf.mxu1 }
  0xf5   :  { %v664_v4 = vmax.f32 %v506_v63, 0.0  ;;  %v521_v8 = vadd.f32 %v1883_v3, %v2616_v59  ;;  %v586_v51 = vadd.f32 %v585_v6, %v2616_v59  ;;  %v681_v62 = vmax.f32 %v591_v56, 0.0 }
  0xf6   :  { %v515_v9 = vpop.f32.mrf.mxu0  ;;  %v2624_v11 = vpop.f32.mrf.mxu1 }
  0xf7   :  { %v516_v5 = vadd.f32 %v515_v9, %v2616_v59  ;;  %1958 = vmatprep.mubr.f32.mxu1 %v664_v4  ;;  %v667_v17 = vmax.f32 %v521_v8, 0.0  ;;  %v680_v58 = vmax.f32 %v586_v51, 0.0  ;;  %v601_v63 = vadd.f32 %v2624_v11, %v2616_v59 }
  0xf8   :  { %v1886_v10 = vpop.f32.mrf.mxu0  ;;  %1959 = vmatmul.mubr.f32.vlgmr.msra.gmra.mxu1 %v665_v7  ;;  %v595_v16 = vpop.f32.mrf.mxu1 }
  0xf9   :  { %v666_v12 = vmax.f32 %v516_v5, 0.0  ;;  %v531_v13 = vadd.f32 %v1886_v10, %v2616_v59  ;;  %v596_v60 = vadd.f32 %v595_v16, %v2616_v59  ;;  %v683_v7 = vmax.f32 %v601_v63, 0.0 }
  0xfa   :  { %v525_v18 = vpop.f32.mrf.mxu0  ;;  %v2628_v20 = vpop.f32.mrf.mxu1 }
  0xfb   :  { %v526_v19 = vadd.f32 %v525_v18, %v2616_v59  ;;  %1961 = vmatprep.mubr.f32.mxu1 %v666_v12  ;;  %v669_v21 = vmax.f32 %v531_v13, 0.0  ;;  %v682_v3 = vmax.f32 %v596_v60, 0.0  ;;  %v611_v1 = vadd.f32 %v2628_v20, %v2616_v59 }
  0xfc   :  { %v1889_v22 = vpop.f32.mrf.mxu0  ;;  %1962 = vmatmul.mubr.f32.gmra.mxu1 %v667_v17  ;;  %v605_v26 = vpop.f32.mrf.mxu1 }
  0xfd   :  { %v668_v23 = vmax.f32 %v526_v19, 0.0  ;;  %v541_v24 = vadd.f32 %v1889_v22, %v2616_v59  ;;  %v606_v4 = vadd.f32 %v605_v26, %v2616_v59  ;;  %v685_v10 = vmax.f32 %v611_v1, 0.0 }
  0xfe   :  { %v535_v25 = vpop.f32.mrf.mxu0  ;;  %v1913_v33 = vpop.f32.mrf.mxu1 }
  0xff   :  { %v536_v27 = vadd.f32 %v535_v25, %v2616_v59  ;;  %1964 = vmatprep.mubr.f32.mxu1 %v668_v23  ;;  %v671_v28 = vmax.f32 %v541_v24, 0.0  ;;  %v684_v8 = vmax.f32 %v606_v4, 0.0  ;;  %v621_v12 = vadd.f32 %v1913_v33, %v2616_v59 }
 0x100   :  { %v1892_v29 = vpop.f32.mrf.mxu0  ;;  %1965 = vmatmul.mubr.f32.gmra.mxu1 %v669_v21  ;;  %v615_v40 = vpop.f32.mrf.mxu1 }
 0x101   :  { %v670_v30 = vmax.f32 %v536_v27, 0.0  ;;  %v551_v31 = vadd.f32 %v1892_v29, %v2616_v59  ;;  %v616_v9 = vadd.f32 %v615_v40, %v2616_v59  ;;  %v687_v17 = vmax.f32 %v621_v12, 0.0 }
 0x102   :  { %v545_v32 = vpop.f32.mrf.mxu0  ;;  %v1916_v45 = vpop.f32.mrf.mxu1 }
 0x103   :  { %v546_v34 = vadd.f32 %v545_v32, %v2616_v59  ;;  %1967 = vmatprep.mubr.f32.mxu1 %v670_v30  ;;  %v673_v35 = vmax.f32 %v551_v31, 0.0  ;;  %v686_v11 = vmax.f32 %v616_v9, 0.0  ;;  %v631_v18 = vadd.f32 %v1916_v45, %v2616_v59 }
 0x104   :  { %v1895_v36 = vpop.f32.mrf.mxu0  ;;  %1968 = vmatmul.mubr.f32.gmra.mxu1 %v671_v28  ;;  %v625_v53 = vpop.f32.mrf.mxu1 }
 0x105   :  { %v672_v37 = vmax.f32 %v546_v34, 0.0  ;;  %v561_v38 = vadd.f32 %v1895_v36, %v2616_v59  ;;  %v626_v13 = vadd.f32 %v625_v53, %v2616_v59  ;;  %v689_v22 = vmax.f32 %v631_v18, 0.0  ;;  %v974_v36 = vld [vmem:[%s3298_s2 + $0x8] sm:$0xff] }
 0x106   :  { %v555_v39 = vpop.f32.mrf.mxu0  ;;  %v1919_v61 = vpop.f32.mrf.mxu1 }
 0x107   :  { %v556_v41 = vadd.f32 %v555_v39, %v2616_v59  ;;  %1970 = vmatprep.mubr.f32.mxu1 %v672_v37  ;;  %v675_v0 = vmax.f32 %v561_v38, 0.0  ;;  %v688_v19 = vmax.f32 %v626_v13, 0.0  ;;  %v641_v23 = vadd.f32 %v1919_v61, %v2616_v59 }
 0x108   :  { %v1898_v2 = vpop.f32.mrf.mxu0  ;;  %1971 = vmatmul.mubr.f32.gmra.mxu1 %v673_v35  ;;  %v635_v6 = vpop.f32.mrf.mxu1  ;;  %v975_v35 = vld [vmem:[%s3298_s2 + $0x10] sm:$0xff] }
 0x109   :  { %v674_v42 = vmax.f32 %v556_v41, 0.0  ;;  %v571_v43 = vadd.f32 %v1898_v2, %v2616_v59  ;;  %v636_v20 = vadd.f32 %v635_v6, %v2616_v59  ;;  %v691_v27 = vmax.f32 %v641_v23, 0.0  ;;  %2032 = vmatprep.subr.mxu0 %v975_v35 }
 0x10a   :  { %v565_v44 = vpop.f32.mrf.mxu0  ;;  %v1922_v5 = vpop.f32.mrf.mxu1  ;;  %2033 = vmatpush3.msra.mxu0 %v975_v35 }
 0x10b   :  { %v566_v46 = vadd.f32 %v565_v44, %v2616_v59  ;;  %1973 = vmatprep.mubr.f32.mxu1 %v674_v42  ;;  %v677_v47 = vmax.f32 %v571_v43, 0.0  ;;  %v690_v24 = vmax.f32 %v636_v20, 0.0  ;;  %v651_v28 = vadd.f32 %v1922_v5, %v2616_v59  ;;  %2034 = vmatprep.subr.mxu0 %v974_v36 }
 0x10c   :  { %v1901_v48 = vpop.f32.mrf.mxu0  ;;  %1974 = vmatmul.mubr.f32.gmra.mxu1 %v675_v0  ;;  %v645_v16 = vpop.f32.mrf.mxu1  ;;  %2035 = vmatpush3.msra.mxu0 %v974_v36 }
 0x10d   :  { %v676_v49 = vmax.f32 %v566_v46, 0.0  ;;  %v581_v50 = vadd.f32 %v1901_v48, %v2616_v59  ;;  %v646_v25 = vadd.f32 %v645_v16, %v2616_v59  ;;  %v693_v31 = vmax.f32 %v651_v28, 0.0 }
 0x10e   :  { %v575_v52 = vpop.f32.mrf.mxu0  ;;  %v1925_v21 = vpop.f32.mrf.mxu1 }
 0x10f   :  { %v576_v54 = vadd.f32 %v575_v52, %v2616_v59  ;;  %1976 = vmatprep.mubr.f32.mxu1 %v676_v49  ;;  %v679_v55 = vmax.f32 %v581_v50, 0.0  ;;  %v692_v29 = vmax.f32 %v646_v25, 0.0  ;;  %v661_v32 = vadd.f32 %v1925_v21, %v2616_v59 }
 0x110   :  { %1977 = vmatmul.mubr.f32.gmra.mxu1 %v677_v47  ;;  %v655_v26 = vpop.f32.mrf.mxu1 }
 0x111   :  { %v678_v57 = vmax.f32 %v576_v54, 0.0  ;;  %v656_v30 = vadd.f32 %v655_v26, %v2616_v59  ;;  %v695_v34 = vmax.f32 %v661_v32, 0.0  ;;  %v973_v59 = vld [vmem:[%s3298_s2] sm:$0xff] }
 0x112   :  { %2036 = vmatprep.subr.mxu0 %v973_v59 }
 0x113   :  { %1979 = vmatprep.mubr.f32.mxu1 %v678_v57  ;;  %v694_v33 = vmax.f32 %v656_v30, 0.0  ;;  %2037 = vmatpush3.msra.mxu0 %v973_v59 }
 0x114   :  { %1980 = vmatmul.mubr.f32.gmra.mxu1 %v679_v55 }
 0x115   :  { %1982 = vmatprep.mubr.f32.mxu1 %v680_v58 }
 0x118   :  { %1983 = vmatmul.mubr.f32.gmra.mxu1 %v681_v62 }
 0x119   :  { %1985 = vmatprep.mubr.f32.mxu1 %v682_v3 }
 0x11c   :  { %1986 = vmatmul.mubr.f32.gmra.mxu1 %v683_v7 }
 0x11d   :  { %1988 = vmatprep.mubr.f32.mxu1 %v684_v8 }
 0x120   :  { %1989 = vmatmul.mubr.f32.gmra.mxu1 %v685_v10 }
 0x121   :  { %1991 = vmatprep.mubr.f32.mxu1 %v686_v11 }
 0x124   :  { %1992 = vmatmul.mubr.f32.gmra.mxu1 %v687_v17 }
 0x125   :  { %1994 = vmatprep.mubr.f32.mxu1 %v688_v19 }
 0x128   :  { %1995 = vmatmul.mubr.f32.gmra.mxu1 %v689_v22 }
 0x129   :  { %1997 = vmatprep.mubr.f32.mxu1 %v690_v24 }
 0x12c   :  { %1998 = vmatmul.mubr.f32.gmra.mxu1 %v691_v27 }
 0x12d   :  { %2000 = vmatprep.mubr.f32.mxu1 %v692_v29 }
 0x130   :  { %2001 = vmatmul.mubr.f32.gmra.mxu1 %v693_v31 }
 0x131   :  { %2003 = vmatprep.mubr.f32.mxu1 %v694_v33 }
 0x134   :  { %2004 = vmatmul.mubr.f32.gmra.mxu1 %v695_v34 }
 0x1b8   :  { %v1960_v37 = vpop.f32.mrf.mxu1 }
 0x1b9   :  { %v788_v38 = vadd.f32 %v1960_v37, %v2336_v14 }
 0x1ba   :  { %v782_v39 = vpop.f32.mrf.mxu1 }
 0x1bb   :  { %v783_v40 = vadd.f32 %v782_v39, %v2336_v14  ;;  %v942_v2 = vmax.f32 %v788_v38, 0.0 }
 0x1bc   :  { %v1963_v41 = vpop.f32.mrf.mxu1 }
 0x1bd   :  { %v941_v0 = vmax.f32 %v783_v40, 0.0  ;;  %v798_v42 = vadd.f32 %v1963_v41, %v2336_v14 }
 0x1be   :  { %v792_v43 = vpop.f32.mrf.mxu1 }
 0x1bf   :  { %v793_v44 = vadd.f32 %v792_v43, %v2336_v14  ;;  %2038 = vmatprep.mubr.f32.mxu0 %v941_v0  ;;  %v944_v47 = vmax.f32 %v798_v42, 0.0 }
 0x1c0   :  { %v1966_v45 = vpop.f32.mrf.mxu1  ;;  %2039 = vmatmul.mubr.f32.vlgmr.msra.gmra.mxu0 %v942_v2 }
 0x1c1   :  { %v943_v46 = vmax.f32 %v793_v44, 0.0  ;;  %v808_v48 = vadd.f32 %v1966_v45, %v2336_v14 }
 0x1c2   :  { %v802_v49 = vpop.f32.mrf.mxu1 }
 0x1c3   :  { %v803_v50 = vadd.f32 %v802_v49, %v2336_v14  ;;  %2041 = vmatprep.mubr.f32.mxu0 %v943_v46  ;;  %v946_v53 = vmax.f32 %v808_v48, 0.0 }
 0x1c4   :  { %v1969_v51 = vpop.f32.mrf.mxu1  ;;  %2042 = vmatmul.mubr.f32.gmra.mxu0 %v944_v47 }
 0x1c5   :  { %v945_v52 = vmax.f32 %v803_v50, 0.0  ;;  %v818_v54 = vadd.f32 %v1969_v51, %v2336_v14 }
 0x1c6   :  { %v812_v55 = vpop.f32.mrf.mxu1 }
 0x1c7   :  { %v813_v56 = vadd.f32 %v812_v55, %v2336_v14  ;;  %2044 = vmatprep.mubr.f32.mxu0 %v945_v52  ;;  %v948_v60 = vmax.f32 %v818_v54, 0.0 }
 0x1c8   :  { %v1972_v57 = vpop.f32.mrf.mxu1  ;;  %2045 = vmatmul.mubr.f32.gmra.mxu0 %v946_v53 }
 0x1c9   :  { %v947_v58 = vmax.f32 %v813_v56, 0.0  ;;  %v828_v61 = vadd.f32 %v1972_v57, %v2336_v14 }
 0x1ca   :  { %v822_v62 = vpop.f32.mrf.mxu1 }
 0x1cb   :  { %v823_v63 = vadd.f32 %v822_v62, %v2336_v14  ;;  %2047 = vmatprep.mubr.f32.mxu0 %v947_v58  ;;  %v950_v6 = vmax.f32 %v828_v61, 0.0 }
 0x1cc   :  { %v1975_v3 = vpop.f32.mrf.mxu1  ;;  %2048 = vmatmul.mubr.f32.gmra.mxu0 %v948_v60 }
 0x1cd   :  { %v949_v4 = vmax.f32 %v823_v63, 0.0  ;;  %v838_v7 = vadd.f32 %v1975_v3, %v2336_v14 }
 0x1ce   :  { %v832_v1 = vpop.f32.mrf.mxu1 }
 0x1cf   :  { %v833_v8 = vadd.f32 %v832_v1, %v2336_v14  ;;  %2050 = vmatprep.mubr.f32.mxu0 %v949_v4  ;;  %v952_v10 = vmax.f32 %v838_v7, 0.0 }
 0x1d0   :  { %v1978_v9 = vpop.f32.mrf.mxu1  ;;  %2051 = vmatmul.mubr.f32.gmra.mxu0 %v950_v6 }
 0x1d1   :  { %v951_v5 = vmax.f32 %v833_v8, 0.0  ;;  %v848_v12 = vadd.f32 %v1978_v9, %v2336_v14 }
 0x1d2   :  { %v842_v11 = vpop.f32.mrf.mxu1 }
 0x1d3   :  { %v843_v13 = vadd.f32 %v842_v11, %v2336_v14  ;;  %2053 = vmatprep.mubr.f32.mxu0 %v951_v5  ;;  %v954_v18 = vmax.f32 %v848_v12, 0.0 }
 0x1d4   :  { %v1981_v16 = vpop.f32.mrf.mxu1  ;;  %2054 = vmatmul.mubr.f32.gmra.mxu0 %v952_v10 }
 0x1d5   :  { %v953_v17 = vmax.f32 %v843_v13, 0.0  ;;  %v858_v19 = vadd.f32 %v1981_v16, %v2336_v14 }
 0x1d6   :  { %v852_v20 = vpop.f32.mrf.mxu1 }
 0x1d7   :  { %v853_v21 = vadd.f32 %v852_v20, %v2336_v14  ;;  %2056 = vmatprep.mubr.f32.mxu0 %v953_v17  ;;  %v956_v24 = vmax.f32 %v858_v19, 0.0 }
 0x1d8   :  { %v1984_v22 = vpop.f32.mrf.mxu1  ;;  %2057 = vmatmul.mubr.f32.gmra.mxu0 %v954_v18 }
 0x1d9   :  { %v955_v23 = vmax.f32 %v853_v21, 0.0  ;;  %v868_v25 = vadd.f32 %v1984_v22, %v2336_v14 }
 0x1da   :  { %v862_v26 = vpop.f32.mrf.mxu1 }
 0x1db   :  { %v863_v27 = vadd.f32 %v862_v26, %v2336_v14  ;;  %2059 = vmatprep.mubr.f32.mxu0 %v955_v23  ;;  %v958_v30 = vmax.f32 %v868_v25, 0.0 }
 0x1dc   :  { %v1987_v28 = vpop.f32.mrf.mxu1  ;;  %2060 = vmatmul.mubr.f32.gmra.mxu0 %v956_v24 }
 0x1dd   :  { %v957_v29 = vmax.f32 %v863_v27, 0.0  ;;  %v878_v31 = vadd.f32 %v1987_v28, %v2336_v14 }
 0x1de   :  { %v872_v32 = vpop.f32.mrf.mxu1 }
 0x1df   :  { %v873_v33 = vadd.f32 %v872_v32, %v2336_v14  ;;  %2062 = vmatprep.mubr.f32.mxu0 %v957_v29  ;;  %v960_v36 = vmax.f32 %v878_v31, 0.0 }
 0x1e0   :  { %v1990_v34 = vpop.f32.mrf.mxu1  ;;  %2063 = vmatmul.mubr.f32.gmra.mxu0 %v958_v30 }
 0x1e1   :  { %v959_v35 = vmax.f32 %v873_v33, 0.0  ;;  %v888_v59 = vadd.f32 %v1990_v34, %v2336_v14 }
 0x1e2   :  { %v882_v37 = vpop.f32.mrf.mxu1 }
 0x1e3   :  { %v883_v38 = vadd.f32 %v882_v37, %v2336_v14  ;;  %2065 = vmatprep.mubr.f32.mxu0 %v959_v35  ;;  %v962_v41 = vmax.f32 %v888_v59, 0.0 }
 0x1e4   :  { %v1993_v39 = vpop.f32.mrf.mxu1  ;;  %2066 = vmatmul.mubr.f32.gmra.mxu0 %v960_v36 }
 0x1e5   :  { %v961_v40 = vmax.f32 %v883_v38, 0.0  ;;  %v898_v0 = vadd.f32 %v1993_v39, %v2336_v14 }
 0x1e6   :  { %v892_v2 = vpop.f32.mrf.mxu1 }
 0x1e7   :  { %v893_v42 = vadd.f32 %v892_v2, %v2336_v14  ;;  %2068 = vmatprep.mubr.f32.mxu0 %v961_v40  ;;  %v964_v45 = vmax.f32 %v898_v0, 0.0 }
 0x1e8   :  { %v1996_v43 = vpop.f32.mrf.mxu1  ;;  %2069 = vmatmul.mubr.f32.gmra.mxu0 %v962_v41 }
 0x1e9   :  { %v963_v44 = vmax.f32 %v893_v42, 0.0  ;;  %v908_v46 = vadd.f32 %v1996_v43, %v2336_v14 }
 0x1ea   :  { %v902_v47 = vpop.f32.mrf.mxu1 }
 0x1eb   :  { %v903_v48 = vadd.f32 %v902_v47, %v2336_v14  ;;  %2071 = vmatprep.mubr.f32.mxu0 %v963_v44  ;;  %v966_v51 = vmax.f32 %v908_v46, 0.0 }
 0x1ec   :  { %v1999_v49 = vpop.f32.mrf.mxu1  ;;  %2072 = vmatmul.mubr.f32.gmra.mxu0 %v964_v45 }
 0x1ed   :  { %v965_v50 = vmax.f32 %v903_v48, 0.0  ;;  %v918_v52 = vadd.f32 %v1999_v49, %v2336_v14 }
 0x1ee   :  { %v912_v53 = vpop.f32.mrf.mxu1 }
 0x1ef   :  { %v913_v54 = vadd.f32 %v912_v53, %v2336_v14  ;;  %2074 = vmatprep.mubr.f32.mxu0 %v965_v50  ;;  %v968_v57 = vmax.f32 %v918_v52, 0.0 }
 0x1f0   :  { %v2002_v55 = vpop.f32.mrf.mxu1  ;;  %2075 = vmatmul.mubr.f32.gmra.mxu0 %v966_v51 }
 0x1f1   :  { %v967_v56 = vmax.f32 %v913_v54, 0.0  ;;  %v928_v58 = vadd.f32 %v2002_v55, %v2336_v14 }
 0x1f2   :  { %v922_v60 = vpop.f32.mrf.mxu1 }
 0x1f3   :  { %v923_v61 = vadd.f32 %v922_v60, %v2336_v14  ;;  %2077 = vmatprep.mubr.f32.mxu0 %v967_v56  ;;  %v970_v3 = vmax.f32 %v928_v58, 0.0 }
 0x1f4   :  { %v2005_v62 = vpop.f32.mrf.mxu1  ;;  %2078 = vmatmul.mubr.f32.gmra.mxu0 %v968_v57 }
 0x1f5   :  { %v969_v63 = vmax.f32 %v923_v61, 0.0  ;;  %v938_v4 = vadd.f32 %v2005_v62, %v2336_v14 }
 0x1f6   :  { %v932_v6 = vpop.f32.mrf.mxu1 }
 0x1f7   :  { %v933_v7 = vadd.f32 %v932_v6, %v2336_v14  ;;  %2080 = vmatprep.mubr.f32.mxu0 %v969_v63  ;;  %v972_v8 = vmax.f32 %v938_v4, 0.0 }
 0x1f8   :  { %2081 = vmatmul.mubr.f32.gmra.mxu0 %v970_v3 }
 0x1f9   :  { %v971_v1 = vmax.f32 %v933_v7, 0.0 }
 0x1fb   :  { %2083 = vmatprep.mubr.f32.mxu0 %v971_v1 }
 0x1fc   :  { %2084 = vmatmul.mubr.f32.gmra.mxu0 %v972_v8 }
 0x280   :  { %v2040_v9 = vpop.f32.mrf.mxu0 }
 0x281   :  { %v2701_v5 = vadd.f32 %v2040_v9, %v2339_v15 }
 0x282   :  { %v1059_v10 = vpop.f32.mrf.mxu0 }
 0x283   :  { %v2704_v12 = vadd.f32 %v1059_v10, %v2339_v15  ;;  %v1219_v11 = vmul.f32 %v2701_v5, %v2701_v5 }
 0x284   :  { %v2043_v13 = vpop.f32.mrf.mxu0 }
 0x285   :  { %v2709_v14 = vadd.f32 %v2043_v13, %v2339_v15  ;;  %1252 = vadd.xlane.f32.xlu0 %v1219_v11  ;;  %v1218_v19 = vmul.f32 %v2704_v12, %v2704_v12 }
 0x286   :  { %v1069_v16 = vpop.f32.mrf.mxu0 }
 0x287   :  { %v2712_v17 = vadd.f32 %v1069_v16, %v2339_v15  ;;  %v1221_v18 = vmul.f32 %v2709_v14, %v2709_v14 }
 0x288   :  { %v2046_v20 = vpop.f32.mrf.mxu0 }
 0x289   :  { %1256 = vadd.xlane.f32.xlu1 %v1221_v18  ;;  %1250 = vadd.xlane.f32.xlu0 %v1218_v19  ;;  %v2719_v22 = vadd.f32 %v2046_v20, %v2339_v15  ;;  %v1220_v24 = vmul.f32 %v2712_v17, %v2712_v17 }
 0x28a   :  { %v1079_v21 = vpop.f32.mrf.mxu0 }
 0x28b   :  { %v2722_v23 = vadd.f32 %v1079_v21, %v2339_v15  ;;  %v1223_v30 = vmul.f32 %v2719_v22, %v2719_v22 }
 0x28c   :  { %v2049_v25 = vpop.f32.mrf.mxu0 }
 0x28d   :  { %1254 = vadd.xlane.f32.xlu1 %v1220_v24  ;;  %v1222_v26 = vmul.f32 %v2722_v23, %v2722_v23  ;;  %v2729_v28 = vadd.f32 %v2049_v25, %v2339_v15 }
 0x28e   :  { %v1089_v27 = vpop.f32.mrf.mxu0 }
 0x28f   :  { %v2732_v29 = vadd.f32 %v1089_v27, %v2339_v15  ;;  %1258 = vadd.xlane.f32.xlu0 %v1222_v26  ;;  %v1225_v36 = vmul.f32 %v2729_v28, %v2729_v28 }
 0x290   :  { %v2052_v31 = vpop.f32.mrf.mxu0 }
 0x291   :  { %1260 = vadd.xlane.f32.xlu1 %v1223_v30  ;;  %v1224_v32 = vmul.f32 %v2732_v29, %v2732_v29  ;;  %v2739_v34 = vadd.f32 %v2052_v31, %v2339_v15 }
 0x292   :  { %v1099_v33 = vpop.f32.mrf.mxu0 }
 0x293   :  { %v2742_v35 = vadd.f32 %v1099_v33, %v2339_v15  ;;  %1262 = vadd.xlane.f32.xlu0 %v1224_v32  ;;  %v1227_v41 = vmul.f32 %v2739_v34, %v2739_v34 }
 0x294   :  { %v2055_v59 = vpop.f32.mrf.mxu0 }
 0x295   :  { %1264 = vadd.xlane.f32.xlu1 %v1225_v36  ;;  %v1226_v37 = vmul.f32 %v2742_v35, %v2742_v35  ;;  %v2749_v39 = vadd.f32 %v2055_v59, %v2339_v15 }
 0x296   :  { %v1109_v38 = vpop.f32.mrf.mxu0 }
 0x297   :  { %v2752_v40 = vadd.f32 %v1109_v38, %v2339_v15  ;;  %1266 = vadd.xlane.f32.xlu0 %v1226_v37  ;;  %v1229_v45 = vmul.f32 %v2749_v39, %v2749_v39 }
 0x298   :  { %v2058_v0 = vpop.f32.mrf.mxu0 }
 0x299   :  { %1268 = vadd.xlane.f32.xlu1 %v1227_v41  ;;  %v1228_v2 = vmul.f32 %v2752_v40, %v2752_v40  ;;  %v2759_v43 = vadd.f32 %v2058_v0, %v2339_v15 }
 0x29a   :  { %v1119_v42 = vpop.f32.mrf.mxu0 }
 0x29b   :  { %v2762_v44 = vadd.f32 %v1119_v42, %v2339_v15  ;;  %1270 = vadd.xlane.f32.xlu0 %v1228_v2  ;;  %v1231_v51 = vmul.f32 %v2759_v43, %v2759_v43 }
 0x29c   :  { %v2061_v46 = vpop.f32.mrf.mxu0 }
 0x29d   :  { %1272 = vadd.xlane.f32.xlu1 %v1229_v45  ;;  %v1230_v47 = vmul.f32 %v2762_v44, %v2762_v44  ;;  %v2769_v49 = vadd.f32 %v2061_v46, %v2339_v15 }
 0x29e   :  { %v1129_v48 = vpop.f32.mrf.mxu0 }
 0x29f   :  { %v2772_v50 = vadd.f32 %v1129_v48, %v2339_v15  ;;  %1274 = vadd.xlane.f32.xlu0 %v1230_v47  ;;  %v1233_v57 = vmul.f32 %v2769_v49, %v2769_v49 }
 0x2a0   :  { %v2064_v52 = vpop.f32.mrf.mxu0 }
 0x2a1   :  { %1276 = vadd.xlane.f32.xlu1 %v1231_v51  ;;  %v1232_v53 = vmul.f32 %v2772_v50, %v2772_v50  ;;  %v2779_v55 = vadd.f32 %v2064_v52, %v2339_v15 }
 0x2a2   :  { %v1139_v54 = vpop.f32.mrf.mxu0 }
 0x2a3   :  { %v2782_v56 = vadd.f32 %v1139_v54, %v2339_v15  ;;  %1278 = vadd.xlane.f32.xlu0 %v1232_v53  ;;  %v1235_v3 = vmul.f32 %v2779_v55, %v2779_v55 }
 0x2a4   :  { %v2067_v58 = vpop.f32.mrf.mxu0 }
 0x2a5   :  { %1280 = vadd.xlane.f32.xlu1 %v1233_v57  ;;  %v1234_v60 = vmul.f32 %v2782_v56, %v2782_v56  ;;  %v2789_v62 = vadd.f32 %v2067_v58, %v2339_v15 }
 0x2a6   :  { %v1149_v61 = vpop.f32.mrf.mxu0 }
 0x2a7   :  { %v2792_v63 = vadd.f32 %v1149_v61, %v2339_v15  ;;  %1282 = vadd.xlane.f32.xlu0 %v1234_v60  ;;  %v1237_v9 = vmul.f32 %v2789_v62, %v2789_v62 }
 0x2a8   :  { %v2070_v4 = vpop.f32.mrf.mxu0 }
 0x2a9   :  { %1284 = vadd.xlane.f32.xlu1 %v1235_v3  ;;  %v1236_v6 = vmul.f32 %v2792_v63, %v2792_v63  ;;  %v2799_v1 = vadd.f32 %v2070_v4, %v2339_v15 }
 0x2aa   :  { %v1159_v7 = vpop.f32.mrf.mxu0 }
 0x2ab   :  { %v2802_v8 = vadd.f32 %v1159_v7, %v2339_v15  ;;  %1286 = vadd.xlane.f32.xlu0 %v1236_v6  ;;  %v1239_v19 = vmul.f32 %v2799_v1, %v2799_v1 }
 0x2ac   :  { %v2073_v10 = vpop.f32.mrf.mxu0 }
 0x2ad   :  { %1288 = vadd.xlane.f32.xlu1 %v1237_v9  ;;  %v1238_v11 = vmul.f32 %v2802_v8, %v2802_v8  ;;  %v2809_v16 = vadd.f32 %v2073_v10, %v2339_v15 }
 0x2ae   :  { %v1169_v13 = vpop.f32.mrf.mxu0 }
 0x2af   :  { %v2812_v18 = vadd.f32 %v1169_v13, %v2339_v15  ;;  %1290 = vadd.xlane.f32.xlu0 %v1238_v11  ;;  %v1241_v27 = vmul.f32 %v2809_v16, %v2809_v16 }
 0x2b0   :  { %v2076_v20 = vpop.f32.mrf.mxu0 }
 0x2b1   :  { %1292 = vadd.xlane.f32.xlu1 %v1239_v19  ;;  %v1240_v21 = vmul.f32 %v2812_v18, %v2812_v18  ;;  %v2819_v25 = vadd.f32 %v2076_v20, %v2339_v15 }
 0x2b2   :  { %v1179_v24 = vpop.f32.mrf.mxu0 }
 0x2b3   :  { %v2822_v26 = vadd.f32 %v1179_v24, %v2339_v15  ;;  %1294 = vadd.xlane.f32.xlu0 %v1240_v21  ;;  %v1243_v59 = vmul.f32 %v2819_v25, %v2819_v25 }
 0x2b4   :  { %v2079_v30 = vpop.f32.mrf.mxu0 }
 0x2b5   :  { %1296 = vadd.xlane.f32.xlu1 %v1241_v27  ;;  %v1242_v31 = vmul.f32 %v2822_v26, %v2822_v26  ;;  %v2829_v33 = vadd.f32 %v2079_v30, %v2339_v15 }
 0x2b6   :  { %v1189_v32 = vpop.f32.mrf.mxu0 }
 0x2b7   :  { %v2832_v36 = vadd.f32 %v1189_v32, %v2339_v15  ;;  %1298 = vadd.xlane.f32.xlu0 %v1242_v31  ;;  %v1245_v42 = vmul.f32 %v2829_v33, %v2829_v33 }
 0x2b8   :  { %v2082_v37 = vpop.f32.mrf.mxu0 }
 0x2b9   :  { %1300 = vadd.xlane.f32.xlu1 %v1243_v59  ;;  %v1244_v38 = vmul.f32 %v2832_v36, %v2832_v36  ;;  %v2839_v0 = vadd.f32 %v2082_v37, %v2339_v15 }
 0x2ba   :  { %v1199_v41 = vpop.f32.mrf.mxu0 }
 0x2bb   :  { %v2842_v2 = vadd.f32 %v1199_v41, %v2339_v15  ;;  %1302 = vadd.xlane.f32.xlu0 %v1244_v38  ;;  %v1247_v52 = vmul.f32 %v2839_v0, %v2839_v0 }
 0x2bc   :  { %v2085_v45 = vpop.f32.mrf.mxu0 }
 0x2bd   :  { %1304 = vadd.xlane.f32.xlu1 %v1245_v42  ;;  %v1246_v46 = vmul.f32 %v2842_v2, %v2842_v2  ;;  %v2849_v48 = vadd.f32 %v2085_v45, %v2339_v15 }
 0x2be   :  { %v1209_v47 = vpop.f32.mrf.mxu0 }
 0x2bf   :  { %v2852_v51 = vadd.f32 %v1209_v47, %v2339_v15  ;;  %1306 = vadd.xlane.f32.xlu0 %v1246_v46  ;;  %v1249_v54 = vmul.f32 %v2849_v48, %v2849_v48 }
 0x2c1   :  { %1308 = vadd.xlane.f32.xlu1 %v1247_v52  ;;  %v1248_v53 = vmul.f32 %v2852_v51, %v2852_v51 }
 0x2c3   :  { %1310 = vadd.xlane.f32.xlu0 %v1248_v53 }
 0x2c5   :  { %1312 = vadd.xlane.f32.xlu1 %v1249_v54 }
 0x30e   :  { %v1253_v57 = vpop.xlane.xlu0 %1252 }
 0x30f   :  { %2121 = vrsqrt.f32 %v1253_v57  ;;  %vm1323_vm1 = vcmp.eq.f32.partialorder %v1253_v57, inf  ;;  %vm1325_vm2 = vcmp.eq.f32.partialorder %v1253_v57, 0.0  ;;  %v1326_v9 = vand.u32 2147483648, %v1253_v57 }
 0x312   :  { %v1257_v58 = vpop.xlane.xlu1 %1256  ;;  %v1251_v60 = vpop.xlane.xlu0 %1250 }
 0x313   :  { %2123 = vrsqrt.f32 %v1257_v58  ;;  %vm1337_vm3 = vcmp.eq.f32.partialorder %v1257_v58, inf  ;;  %vm1339_vm4 = vcmp.eq.f32.partialorder %v1257_v58, 0.0  ;;  %v1340_v13 = vand.u32 2147483648, %v1257_v58 }
 0x314   :  { %2125 = vrsqrt.f32 %v1251_v60  ;;  %vm1316_vm5 = vcmp.eq.f32.partialorder %v1251_v60, inf  ;;  %vm1318_vm6 = vcmp.eq.f32.partialorder %v1251_v60, 0.0  ;;  %v1319_v21 = vand.u32 2147483648, %v1251_v60 }
 0x316   :  { %v2860_v15 = vpop.xlane.xlu1 %1254 }
 0x317   :  { %2127 = vrsqrt.f32 %v2860_v15  ;;  %vm1330_vm7 = vcmp.eq.f32.partialorder %v2860_v15, inf  ;;  %vm1332_vm8 = vcmp.eq.f32.partialorder %v2860_v15, 0.0  ;;  %v1333_v59 = vand.u32 2147483648, %v2860_v15 }
 0x318   :  { %v2863_v61 = vpop.xlane.xlu0 %1258 }
 0x319   :  { %2129 = vrsqrt.f32 %v2863_v61  ;;  %vm1344_vm9 = vcmp.eq.f32.partialorder %v2863_v61, inf  ;;  %vm1346_vm10 = vcmp.eq.f32.partialorder %v2863_v61, 0.0  ;;  %v1347_v41 = vand.u32 2147483648, %v2863_v61 }
 0x31a   :  { %v2866_v3 = vpop.xlane.xlu1 %1260 }
 0x31b   :  { %2131 = vrsqrt.f32 %v2866_v3  ;;  %vm1351_vm11 = vcmp.eq.f32.partialorder %v2866_v3, inf  ;;  %vm1353_vm12 = vcmp.eq.f32.partialorder %v2866_v3, 0.0 }
 0x31c   :  { %v2122_v4 = vpop.eup %2121  ;;  %v2869_v6 = vpop.xlane.xlu0 %1262 }
 0x31d   :  { %v1322_v7 = vmul.f32 %v2122_v4, %v1253_v57  ;;  %2133 = vrsqrt.f32 %v2869_v6  ;;  %vm1358_vm13 = vcmp.eq.f32.partialorder %v2869_v6, inf  ;;  %vm1360_vm14 = vcmp.eq.f32.partialorder %v2869_v6, 0.0 }
 0x31e   :  { %v2872_v10 = vpop.xlane.xlu1 %1264 }
 0x31f   :  { %v1324_v11 = vsel %vm1323_vm1, %v1253_v57, %v1322_v7  ;;  %2135 = vrsqrt.f32 %v2872_v10  ;;  %vm1365_vm15 = vcmp.eq.f32.partialorder %v2872_v10, inf  ;;  %vm1367_vm0 = vcmp.eq.f32.partialorder %v2872_v10, 0.0 }
 0x320   :  { %v2124_v19 = vpop.eup %2123  ;;  %v1327_v20 = vsel %vm1325_vm2, %v1326_v9, %v1324_v11  ;;  %v2876_v24 = vpop.xlane.xlu0 %1266  ;;  %v1361_v11 = vand.u32 2147483648, %v2869_v6 }
 0x321   :  { %v2126_v27 = vpop.eup %2125  ;;  %v1539_v30 = vadd.f32 0.001, %v1327_v20  ;;  %v1336_v31 = vmul.f32 %v2124_v19, %v1257_v58  ;;  %2137 = vrsqrt.f32 %v2876_v24  ;;  %vm1372_vm1 = vcmp.eq.f32.partialorder %v2876_v24, inf }
 0x322   :  { %v1315_v32 = vmul.f32 %v2126_v27, %v1251_v60  ;;  %v2883_v37 = vpop.xlane.xlu1 %1268  ;;  %vm1374_vm2 = vcmp.eq.f32.partialorder %v2876_v24, 0.0 }
 0x323   :  { %2139 = vrcp.f32 %v1539_v30  ;;  %v1338_v38 = vsel %vm1337_vm3, %v1257_v58, %v1336_v31  ;;  %v1354_v58 = vand.u32 2147483648, %v2866_v3  ;;  %vm1379_vm3 = vcmp.eq.f32.partialorder %v2883_v37, inf }
 0x324   :  { %v2128_v42 = vpop.eup %2127  ;;  %v1341_v45 = vsel %vm1339_vm4, %v1340_v13, %v1338_v38  ;;  %v1317_v46 = vsel %vm1316_vm5, %v1251_v60, %v1315_v32  ;;  %2141 = vrsqrt.f32 %v2883_v37  ;;  %v2892_v47 = vpop.xlane.xlu0 %1270  ;;  %v1368_v32 = vand.u32 2147483648, %v2872_v10 }
 0x325   :  { %v1541_v52 = vadd.f32 0.001, %v1341_v45  ;;  %v1320_v53 = vsel %vm1318_vm6, %v1319_v21, %v1317_v46  ;;  %v1329_v54 = vmul.f32 %v2128_v42, %v2860_v15  ;;  %2143 = vrsqrt.f32 %v2892_v47 }
 0x326   :  { %v2130_v57 = vpop.eup %2129  ;;  %v1538_v4 = vadd.f32 0.001, %v1320_v53  ;;  %v2900_v7 = vpop.xlane.xlu1 %1272  ;;  %vm1381_vm4 = vcmp.eq.f32.partialorder %v2883_v37, 0.0  ;;  %vm1386_vm5 = vcmp.eq.f32.partialorder %v2892_v47, inf  ;;  %vm1388_vm6 = vcmp.eq.f32.partialorder %v2892_v47, 0.0 }
 0x327   :  { %2145 = vrcp.f32 %v1541_v52  ;;  %v1331_v60 = vsel %vm1330_vm7, %v2860_v15, %v1329_v54  ;;  %v1343_v9 = vmul.f32 %v2130_v57, %v2863_v61  ;;  %vm1393_vm7 = vcmp.eq.f32.partialorder %v2900_v7, inf }
 0x328   :  { %v2132_v13 = vpop.eup %2131  ;;  %2147 = vrcp.f32 %v1538_v4  ;;  %v1334_v19 = vsel %vm1332_vm8, %v1333_v59, %v1331_v60  ;;  %v2911_v20 = vpop.xlane.xlu0 %1274  ;;  %vm1395_vm8 = vcmp.eq.f32.partialorder %v2900_v7, 0.0 }
 0x329   :  { %v1540_v21 = vadd.f32 0.001, %v1334_v19  ;;  %v1345_v27 = vsel %vm1344_vm9, %v2863_v61, %v1343_v9  ;;  %v1350_v30 = vmul.f32 %v2132_v13, %v2866_v3  ;;  %2149 = vrsqrt.f32 %v2900_v7 }
 0x32a   :  { %v2134_v31 = vpop.eup %2133  ;;  %v1348_v15 = vsel %vm1346_vm10, %v1347_v41, %v1345_v27  ;;  %2151 = vrsqrt.f32 %v2911_v20  ;;  %v2923_v59 = vpop.xlane.xlu1 %1276  ;;  %v1375_v41 = vand.u32 2147483648, %v2876_v24  ;;  %vm1400_vm9 = vcmp.eq.f32.partialorder %v2911_v20, inf }
 0x32b   :  { %2153 = vrcp.f32 %v1540_v21  ;;  %v1542_v38 = vadd.f32 0.001, %v1348_v15  ;;  %v1352_v42 = vsel %vm1351_vm11, %v2866_v3, %v1350_v30  ;;  %v1357_v45 = vmul.f32 %v2134_v31, %v2869_v6 }
 0x32c   :  { %v2136_v46 = vpop.eup %2135  ;;  %v1355_v61 = vsel %vm1353_vm12, %v1354_v58, %v1352_v42  ;;  %2155 = vrsqrt.f32 %v2923_v59  ;;  %v2934_v52 = vpop.xlane.xlu0 %1278  ;;  %v1389_v42 = vand.u32 2147483648, %v2892_v47  ;;  %vm1402_vm10 = vcmp.eq.f32.partialorder %v2911_v20, 0.0 }
 0x32d   :  { %2157 = vrcp.f32 %v1542_v38  ;;  %v1543_v53 = vadd.f32 0.001, %v1355_v61  ;;  %v1359_v54 = vsel %vm1358_vm13, %v2869_v6, %v1357_v45  ;;  %v1364_v57 = vmul.f32 %v2136_v46, %v2872_v10 }
 0x32e   :  { %v2138_v4 = vpop.eup %2137  ;;  %v1362_v3 = vsel %vm1360_vm14, %v1361_v11, %v1359_v54  ;;  %2159 = vrsqrt.f32 %v2934_v52  ;;  %v2945_v58 = vpop.xlane.xlu1 %1280  ;;  %v1382_v11 = vand.u32 2147483648, %v2883_v37  ;;  %vm1407_vm11 = vcmp.eq.f32.partialorder %v2923_v59, inf }
 0x32f   :  { %2161 = vrcp.f32 %v1543_v53  ;;  %v1544_v60 = vadd.f32 0.001, %v1362_v3  ;;  %v1366_v9 = vsel %vm1365_vm15, %v2872_v10, %v1364_v57  ;;  %v1371_v13 = vmul.f32 %v2138_v4, %v2876_v24 }
 0x330   :  { %v2140_v19 = vpop.eup %2139  ;;  %v1369_v6 = vsel %vm1367_vm0, %v1368_v32, %v1366_v9  ;;  %v2956_v21 = vpop.xlane.xlu0 %1282  ;;  %vm1409_vm12 = vcmp.eq.f32.partialorder %v2923_v59, 0.0  ;;  %vm1414_vm13 = vcmp.eq.f32.partialorder %v2934_v52, inf  ;;  %vm1416_vm14 = vcmp.eq.f32.partialorder %v2934_v52, 0.0 }
 0x331   :  { %v2142_v27 = vpop.eup %2141  ;;  %v1603_v30 = vmul.f32 %v2140_v19, %v2701_v5  ;;  %2163 = vrcp.f32 %v1544_v60  ;;  %v1545_v31 = vadd.f32 0.001, %v1369_v6  ;;  %v1373_v15 = vsel %vm1372_vm1, %v2876_v24, %v1371_v13 }
 0x332   :  { %v2144_v38 = vpop.eup %2143  ;;  %v1376_v10 = vsel %vm1374_vm2, %v1375_v41, %v1373_v15  ;;  %v1378_v32 = vmul.f32 %v2142_v27, %v2883_v37  ;;  %2165 = vrsqrt.f32 %v2945_v58  ;;  %v2967_v45 = vpop.xlane.xlu1 %1284  ;;  %v1396_v41 = vand.u32 2147483648, %v2900_v7 }
 0x333   :  { %1635 = vst [vmem:[%s3302_s6 + $0x8] sm:$0xff] %v1603_v30  ;;  %2167 = vrcp.f32 %v1545_v31  ;;  %v1546_v5 = vadd.f32 0.001, %v1376_v10  ;;  %v1385_v46 = vmul.f32 %v2144_v38, %v2892_v47  ;;  %v1403_v27 = vand.u32 2147483648, %v2911_v20 }
 0x334   :  { %v2146_v24 = vpop.eup %2145  ;;  %v1380_v61 = vsel %vm1379_vm3, %v2883_v37, %v1378_v32  ;;  %2169 = vrsqrt.f32 %v2956_v21  ;;  %v2980_v53 = vpop.xlane.xlu0 %1286  ;;  %vm1421_vm15 = vcmp.eq.f32.partialorder %v2945_v58, inf  ;;  %vm1423_vm0 = vcmp.eq.f32.partialorder %v2945_v58, 0.0 }
 0x335   :  { %v2148_v54 = vpop.eup %2147  ;;  %v1605_v57 = vmul.f32 %v2146_v24, %v2709_v14  ;;  %2171 = vrcp.f32 %v1546_v5  ;;  %v1383_v4 = vsel %vm1381_vm4, %v1382_v11, %v1380_v61  ;;  %v1387_v3 = vsel %vm1386_vm5, %v2892_v47, %v1385_v46 }
 0x336   :  { %v2150_v60 = vpop.eup %2149  ;;  %v1602_v9 = vmul.f32 %v2148_v54, %v2704_v12  ;;  %v1547_v13 = vadd.f32 0.001, %v1383_v4  ;;  %v1390_v19 = vsel %vm1388_vm6, %v1389_v42, %v1387_v3  ;;  %v2992_v6 = vpop.xlane.xlu1 %1288  ;;  %2173 = vrsqrt.f32 %v2967_v45 }
 0x337   :  { %v2152_v14 = vpop.eup %2151  ;;  %1637 = vst [vmem:[%s3302_s6 + $0x18] sm:$0xff] %v1605_v57  ;;  %v1548_v37 = vadd.f32 0.001, %v1390_v19  ;;  %v1392_v11 = vmul.f32 %v2150_v60, %v2900_v7  ;;  %vm1428_vm1 = vcmp.eq.f32.partialorder %v2956_v21, inf  ;;  %vm1430_vm2 = vcmp.eq.f32.partialorder %v2956_v21, 0.0 }
 0x338   :  { %v2154_v12 = vpop.eup %2153  ;;  %1634 = vst [vmem:[%s3302_s6] sm:$0xff] %v1602_v9  ;;  %2175 = vrcp.f32 %v1547_v13  ;;  %v1399_v47 = vmul.f32 %v2152_v14, %v2911_v20  ;;  %v3006_v30 = vpop.xlane.xlu0 %1290  ;;  %v1417_v9 = vand.u32 2147483648, %v2934_v52  ;;  %vm1435_vm3 = vcmp.eq.f32.partialorder %v2967_v45, inf }
 0x339   :  { %v2156_v31 = vpop.eup %2155  ;;  %v1604_v15 = vmul.f32 %v2154_v12, %v2712_v17  ;;  %2177 = vrcp.f32 %v1548_v37  ;;  %v1394_v38 = vsel %vm1393_vm7, %v2900_v7, %v1392_v11  ;;  %vm1437_vm4 = vcmp.eq.f32.partialorder %v2967_v45, 0.0 }
 0x33a   :  { %v2158_v10 = vpop.eup %2157  ;;  %v1397_v32 = vsel %vm1395_vm8, %v1396_v41, %v1394_v38  ;;  %v1401_v42 = vsel %vm1400_vm9, %v2911_v20, %v1399_v47  ;;  %v1406_v5 = vmul.f32 %v2156_v31, %v2923_v59  ;;  %2179 = vrsqrt.f32 %v2980_v53  ;;  %v3020_v17 = vpop.xlane.xlu1 %1292 }
 0x33b   :  { %v2160_v46 = vpop.eup %2159  ;;  %1636 = vst [vmem:[%s3302_s6 + $0x10] sm:$0xff] %v1604_v15  ;;  %v1606_v24 = vmul.f32 %v2158_v10, %v2722_v23  ;;  %v1549_v61 = vadd.f32 0.001, %v1397_v32  ;;  %v1404_v7 = vsel %vm1402_vm10, %v1403_v27, %v1401_v42  ;;  %v1410_v41 = vand.u32 2147483648, %v2923_v59 }
 0x33c   :  { %v2162_v54 = vpop.eup %2161  ;;  %v1550_v57 = vadd.f32 0.001, %v1404_v7  ;;  %v1408_v4 = vsel %vm1407_vm11, %v2923_v59, %v1406_v5  ;;  %v1413_v3 = vmul.f32 %v2160_v46, %v2934_v52  ;;  %v3034_v60 = vpop.xlane.xlu0 %1294  ;;  %v1431_v5 = vand.u32 2147483648, %v2956_v21 }
 0x33d   :  { %1638 = vst [vmem:[%s3302_s6 + $0x20] sm:$0xff] %v1606_v24  ;;  %v1607_v23 = vmul.f32 %v2162_v54, %v2719_v22  ;;  %2181 = vrcp.f32 %v1549_v61  ;;  %v1411_v20 = vsel %vm1409_vm12, %v1410_v41, %v1408_v4  ;;  %v1438_v4 = vand.u32 2147483648, %v2967_v45 }
 0x33e   :  { %v2164_v13 = vpop.eup %2163  ;;  %2183 = vrcp.f32 %v1550_v57  ;;  %v1551_v19 = vadd.f32 0.001, %v1411_v20  ;;  %v1415_v14 = vsel %vm1414_vm13, %v2934_v52, %v1413_v3  ;;  %v3050_v59 = vpop.xlane.xlu1 %1296  ;;  %vm1442_vm5 = vcmp.eq.f32.partialorder %v2980_v53, inf }
 0x33f   :  { %v2166_v37 = vpop.eup %2165  ;;  %1639 = vst [vmem:[%s3302_s6 + $0x28] sm:$0xff] %v1607_v23  ;;  %v1608_v22 = vmul.f32 %v2164_v13, %v2732_v29  ;;  %v1418_v11 = vsel %vm1416_vm14, %v1417_v9, %v1415_v14  ;;  %2185 = vrsqrt.f32 %v2992_v6  ;;  %v1424_v29 = vand.u32 2147483648, %v2945_v58 }
 0x340   :  { %v2168_v12 = vpop.eup %2167  ;;  %2187 = vrcp.f32 %v1551_v19  ;;  %v1552_v47 = vadd.f32 0.001, %v1418_v11  ;;  %v1420_v27 = vmul.f32 %v2166_v37, %v2945_v58  ;;  %v3064_v32 = vpop.xlane.xlu0 %1298  ;;  %vm1444_vm6 = vcmp.eq.f32.partialorder %v2980_v53, 0.0 }
 0x341   :  { %v2170_v52 = vpop.eup %2169  ;;  %1640 = vst [vmem:[%s3302_s6 + $0x30] sm:$0xff] %v1608_v22  ;;  %v1609_v31 = vmul.f32 %v2168_v12, %v2729_v28  ;;  %2189 = vrsqrt.f32 %v3006_v30  ;;  %vm1449_vm7 = vcmp.eq.f32.partialorder %v2992_v6, inf  ;;  %vm1451_vm8 = vcmp.eq.f32.partialorder %v2992_v6, 0.0 }
 0x342   :  { %v2172_v15 = vpop.eup %2171  ;;  %2191 = vrcp.f32 %v1552_v47  ;;  %v1422_v38 = vsel %vm1421_vm15, %v2945_v58, %v1420_v27  ;;  %v1427_v10 = vmul.f32 %v2170_v52, %v2956_v21  ;;  %v3081_v41 = vpop.xlane.xlu1 %1300  ;;  %v1452_v37 = vand.u32 2147483648, %v2992_v6 }
 0x343   :  { %1641 = vst [vmem:[%s3302_s6 + $0x38] sm:$0xff] %v1609_v31  ;;  %v1610_v28 = vmul.f32 %v2172_v15, %v2742_v35  ;;  %v1425_v42 = vsel %vm1423_vm0, %v1424_v29, %v1422_v38  ;;  %2193 = vrsqrt.f32 %v3020_v17  ;;  %v2174_v46 = vpop.eup %2173  ;;  %vm1456_vm9 = vcmp.eq.f32.partialorder %v3006_v30, inf }
 0x344   :  { %v1553_v24 = vadd.f32 0.001, %v1425_v42  ;;  %v1429_v58 = vsel %vm1428_vm1, %v2956_v21, %v1427_v10  ;;  %v1434_v35 = vmul.f32 %v2174_v46, %v2967_v45  ;;  %2195 = vrsqrt.f32 %v3034_v60  ;;  %v3094_v13 = vpop.xlane.xlu0 %1302 }
 0x345   :  { %v2176_v61 = vpop.eup %2175  ;;  %1642 = vst [vmem:[%s3302_s6 + $0x40] sm:$0xff] %v1610_v28  ;;  %v1432_v7 = vsel %vm1430_vm2, %v1431_v5, %v1429_v58  ;;  %vm1458_vm10 = vcmp.eq.f32.partialorder %v3006_v30, 0.0  ;;  %vm1463_vm11 = vcmp.eq.f32.partialorder %v3020_v17, inf  ;;  %vm1465_vm12 = vcmp.eq.f32.partialorder %v3020_v17, 0.0 }
 0x346   :  { %v2178_v54 = vpop.eup %2177  ;;  %v1611_v57 = vmul.f32 %v2176_v61, %v2739_v34  ;;  %2197 = vrcp.f32 %v1553_v24  ;;  %v1554_v21 = vadd.f32 0.001, %v1432_v7  ;;  %v1436_v20 = vsel %vm1435_vm3, %v2967_v45, %v1434_v35  ;;  %v3108_v47 = vpop.xlane.xlu1 %1304 }
 0x347   :  { %v2180_v3 = vpop.eup %2179  ;;  %v1612_v23 = vmul.f32 %v2178_v54, %v2752_v40  ;;  %2199 = vrsqrt.f32 %v3050_v59  ;;  %v1439_v9 = vsel %vm1437_vm4, %v1438_v4, %v1436_v20  ;;  %v1445_v45 = vand.u32 2147483648, %v2980_v53 }
 0x348   :  { %1643 = vst [vmem:[%s3302_s6 + $0x48] sm:$0xff] %v1611_v57  ;;  %2201 = vrcp.f32 %v1554_v21  ;;  %v1441_v34 = vmul.f32 %v2180_v3, %v2980_v53  ;;  %v1555_v40 = vadd.f32 0.001, %v1439_v9  ;;  %v1466_v38 = vand.u32 2147483648, %v3020_v17  ;;  %v3126_v10 = vpop.xlane.xlu0 %1306 }
 0x349   :  { %1644 = vst [vmem:[%s3302_s6 + $0x50] sm:$0xff] %v1612_v23  ;;  %2203 = vrsqrt.f32 %v3064_v32  ;;  %vm1470_vm13 = vcmp.eq.f32.partialorder %v3034_v60, inf  ;;  %vm1472_vm14 = vcmp.eq.f32.partialorder %v3034_v60, 0.0  ;;  %v1473_v58 = vand.u32 2147483648, %v3034_v60 }
 0x34a   :  { %v2182_v19 = vpop.eup %2181  ;;  %v1443_v14 = vsel %vm1442_vm5, %v2980_v53, %v1441_v34  ;;  %2205 = vrcp.f32 %v1555_v40  ;;  %v1459_v53 = vand.u32 2147483648, %v3006_v30  ;;  %vm1477_vm15 = vcmp.eq.f32.partialorder %v3050_v59, inf  ;;  %v3147_v54 = vpop.xlane.xlu1 %1308 }
 0x34b   :  { %v2184_v22 = vpop.eup %2183  ;;  %v1613_v11 = vmul.f32 %v2182_v19, %v2749_v39  ;;  %v1446_v12 = vsel %vm1444_vm6, %v1445_v45, %v1443_v14  ;;  %2207 = vrsqrt.f32 %v3081_v41  ;;  %vm1479_vm0 = vcmp.eq.f32.partialorder %v3050_v59, 0.0 }
 0x34c   :  { %v2186_v27 = vpop.eup %2185  ;;  %v1614_v52 = vmul.f32 %v2184_v22, %v2762_v44  ;;  %v1556_v31 = vadd.f32 0.001, %v1446_v12  ;;  %2209 = vrsqrt.f32 %v3094_v13  ;;  %vm1484_vm1 = vcmp.eq.f32.partialorder %v3064_v32, inf  ;;  %v3170_v14 = vpop.xlane.xlu0 %1310 }
 0x34d   :  { %v2188_v29 = vpop.eup %2187  ;;  %1645 = vst [vmem:[%s3302_s6 + $0x58] sm:$0xff] %v1613_v11  ;;  %v1448_v39 = vmul.f32 %v2186_v27, %v2992_v6  ;;  %vm1486_vm2 = vcmp.eq.f32.partialorder %v3064_v32, 0.0  ;;  %v1487_v22 = vand.u32 2147483648, %v3064_v32  ;;  %vm1491_vm3 = vcmp.eq.f32.partialorder %v3081_v41, inf }
 0x34e   :  { %v2190_v15 = vpop.eup %2189  ;;  %1646 = vst [vmem:[%s3302_s6 + $0x60] sm:$0xff] %v1614_v52  ;;  %v1615_v44 = vmul.f32 %v2188_v29, %v2759_v43  ;;  %2211 = vrcp.f32 %v1556_v31  ;;  %v3184_v52 = vpop.xlane.xlu1 %1312  ;;  %vm1493_vm4 = vcmp.eq.f32.partialorder %v3081_v41, 0.0  ;;  %vm1498_vm5 = vcmp.eq.f32.partialorder %v3094_v13, inf }
 0x34f   :  { %v2192_v28 = vpop.eup %2191  ;;  %v1450_v42 = vsel %vm1449_vm7, %v2992_v6, %v1448_v39  ;;  %v1455_v5 = vmul.f32 %v2190_v15, %v3006_v30  ;;  %2213 = vrsqrt.f32 %v3108_v47  ;;  %v1480_v6 = vand.u32 2147483648, %v3050_v59 }
 0x350   :  { %v2194_v46 = vpop.eup %2193  ;;  %1647 = vst [vmem:[%s3302_s6 + $0x68] sm:$0xff] %v1615_v44  ;;  %v1616_v43 = vmul.f32 %v2192_v28, %v2772_v50  ;;  %v1453_v24 = vsel %vm1451_vm8, %v1452_v37, %v1450_v42  ;;  %2215 = vrsqrt.f32 %v3126_v10  ;;  %vm1500_vm6 = vcmp.eq.f32.partialorder %v3094_v13, 0.0 }
 0x351   :  { %v1557_v61 = vadd.f32 0.001, %v1453_v24  ;;  %v1457_v7 = vsel %vm1456_vm9, %v3006_v30, %v1455_v5  ;;  %v1462_v35 = vmul.f32 %v2194_v46, %v3020_v17  ;;  %v2196_v57 = vpop.eup %2195  ;;  %vm1505_vm7 = vcmp.eq.f32.partialorder %v3108_v47, inf }
 0x352   :  { %1648 = vst [vmem:[%s3302_s6 + $0x70] sm:$0xff] %v1616_v43  ;;  %v1460_v50 = vsel %vm1458_vm10, %v1459_v53, %v1457_v7  ;;  %v1469_v23 = vmul.f32 %v2196_v57, %v3034_v60  ;;  %v1501_v43 = vand.u32 2147483648, %v3094_v13  ;;  %vm1507_vm8 = vcmp.eq.f32.partialorder %v3108_v47, 0.0 }
 0x353   :  { %v2198_v21 = vpop.eup %2197  ;;  %2217 = vrcp.f32 %v1557_v61  ;;  %v1558_v4 = vadd.f32 0.001, %v1460_v50  ;;  %v1464_v3 = vsel %vm1463_vm11, %v3020_v17, %v1462_v35  ;;  %v1508_v57 = vand.u32 2147483648, %v3108_v47 }
 0x354   :  { %v2200_v20 = vpop.eup %2199  ;;  %v1617_v9 = vmul.f32 %v2198_v21, %v2769_v49  ;;  %v1467_v30 = vsel %vm1465_vm12, %v1466_v38, %v1464_v3  ;;  %2219 = vrsqrt.f32 %v3147_v54  ;;  %v1471_v45 = vsel %vm1470_vm13, %v3034_v60, %v1469_v23 }
 0x355   :  { %v2202_v34 = vpop.eup %2201  ;;  %2221 = vrcp.f32 %v1558_v4  ;;  %v1559_v40 = vadd.f32 0.001, %v1467_v30  ;;  %v1476_v19 = vmul.f32 %v2200_v20, %v3050_v59  ;;  %v1474_v17 = vsel %vm1472_vm14, %v1473_v58, %v1471_v45 }
 0x356   :  { %v2204_v37 = vpop.eup %2203  ;;  %1649 = vst [vmem:[%s3302_s6 + $0x78] sm:$0xff] %v1617_v9  ;;  %v1618_v49 = vmul.f32 %v2202_v34, %v2782_v56  ;;  %v1560_v11 = vadd.f32 0.001, %v1474_v17  ;;  %v1494_v60 = vand.u32 2147483648, %v3081_v41  ;;  %vm1512_vm9 = vcmp.eq.f32.partialorder %v3126_v10, inf }
 0x357   :  { %2223 = vrcp.f32 %v1559_v40  ;;  %v1478_v12 = vsel %vm1477_vm15, %v3050_v59, %v1476_v19  ;;  %v1483_v27 = vmul.f32 %v2204_v37, %v3064_v32  ;;  %v2206_v31 = vpop.eup %2205  ;;  %vm1514_vm10 = vcmp.eq.f32.partialorder %v3126_v10, 0.0 }
 0x358   :  { %1650 = vst [vmem:[%s3302_s6 + $0x80] sm:$0xff] %v1618_v49  ;;  %v1481_v56 = vsel %vm1479_vm0, %v1480_v6, %v1478_v12  ;;  %2225 = vrsqrt.f32 %v3170_v14  ;;  %v2208_v53 = vpop.eup %2207  ;;  %v1619_v29 = vmul.f32 %v2206_v31, %v2779_v55  ;;  %v1515_v4 = vand.u32 2147483648, %v3126_v10 }
 0x359   :  { %2227 = vrcp.f32 %v1560_v11  ;;  %v1561_v39 = vadd.f32 0.001, %v1481_v56  ;;  %v1485_v15 = vsel %vm1484_vm1, %v3064_v32, %v1483_v27  ;;  %v2210_v44 = vpop.eup %2209  ;;  %v1490_v38 = vmul.f32 %v2208_v53, %v3081_v41 }
 0x35a   :  { %v1488_v59 = vsel %vm1486_vm2, %v1487_v22, %v1485_v15  ;;  %2229 = vrsqrt.f32 %v3184_v52  ;;  %1651 = vst [vmem:[%s3302_s6 + $0x88] sm:$0xff] %v1619_v29  ;;  %v1497_v42 = vmul.f32 %v2210_v44, %v3094_v13  ;;  %vm1519_vm11 = vcmp.eq.f32.partialorder %v3147_v54, inf }
 0x35b   :  { %v2212_v28 = vpop.eup %2211  ;;  %2231 = vrcp.f32 %v1561_v39  ;;  %v1562_v55 = vadd.f32 0.001, %v1488_v59  ;;  %v1492_v46 = vsel %vm1491_vm3, %v3081_v41, %v1490_v38  ;;  %vm1521_vm12 = vcmp.eq.f32.partialorder %v3147_v54, 0.0 }
 0x35c   :  { %v2214_v5 = vpop.eup %2213  ;;  %v1620_v32 = vmul.f32 %v2212_v28, %v2792_v63  ;;  %v1495_v24 = vsel %vm1493_vm4, %v1494_v60, %v1492_v46  ;;  %v1499_v58 = vsel %vm1498_vm5, %v3094_v13, %v1497_v42  ;;  %vm1526_vm13 = vcmp.eq.f32.partialorder %v3170_v14, inf }
 0x35d   :  { %2233 = vrcp.f32 %v1562_v55  ;;  %v1504_v61 = vmul.f32 %v2214_v5, %v3108_v47  ;;  %v2216_v7 = vpop.eup %2215  ;;  %v1563_v63 = vadd.f32 0.001, %v1495_v24  ;;  %v1502_v35 = vsel %vm1500_vm6, %v1501_v43, %v1499_v58 }
 0x35e   :  { %1652 = vst [vmem:[%s3302_s6 + $0x90] sm:$0xff] %v1620_v32  ;;  %v1564_v50 = vadd.f32 0.001, %v1502_v35  ;;  %v1511_v41 = vmul.f32 %v2216_v7, %v3126_v10  ;;  %v1529_v27 = vand.u32 2147483648, %v3170_v14  ;;  %vm1528_vm14 = vcmp.eq.f32.partialorder %v3170_v14, 0.0 }
 0x35f   :  { %v1506_v6 = vsel %vm1505_vm7, %v3108_v47, %v1504_v61  ;;  %2235 = vrcp.f32 %v1563_v63  ;;  %vm1533_vm15 = vcmp.eq.f32.partialorder %v3184_v52, inf  ;;  %vm1535_vm0 = vcmp.eq.f32.partialorder %v3184_v52, 0.0 }
 0x360   :  { %v2218_v13 = vpop.eup %2217  ;;  %v1509_v21 = vsel %vm1507_vm8, %v1508_v57, %v1506_v6  ;;  %2237 = vrcp.f32 %v1564_v50  ;;  %v1513_v9 = vsel %vm1512_vm9, %v3126_v10, %v1511_v41 }
 0x361   :  { %v2220_v3 = vpop.eup %2219  ;;  %v1621_v23 = vmul.f32 %v2218_v13, %v2789_v62  ;;  %v1565_v20 = vadd.f32 0.001, %v1509_v21  ;;  %v1516_v47 = vsel %vm1514_vm10, %v1515_v4, %v1513_v9  ;;  %v1522_v62 = vand.u32 2147483648, %v3147_v54 }
 0x362   :  { %v2222_v30 = vpop.eup %2221  ;;  %v1518_v34 = vmul.f32 %v2220_v3, %v3147_v54  ;;  %v1566_v45 = vadd.f32 0.001, %v1516_v47 }
 0x363   :  { %1653 = vst [vmem:[%s3302_s6 + $0x98] sm:$0xff] %v1621_v23  ;;  %v1622_v40 = vmul.f32 %v2222_v30, %v2802_v8  ;;  %2239 = vrcp.f32 %v1565_v20 }
 0x364   :  { %v2224_v19 = vpop.eup %2223  ;;  %v1520_v37 = vsel %vm1519_vm11, %v3147_v54, %v1518_v34  ;;  %2241 = vrcp.f32 %v1566_v45 }
 0x365   :  { %v2226_v10 = vpop.eup %2225  ;;  %1654 = vst [vmem:[%s3302_s6 + $0xa0] sm:$0xff] %v1622_v40  ;;  %v1623_v49 = vmul.f32 %v2224_v19, %v2799_v1  ;;  %v1523_v17 = vsel %vm1521_vm12, %v1522_v62, %v1520_v37 }
 0x366   :  { %v2228_v22 = vpop.eup %2227  ;;  %v1567_v8 = vadd.f32 0.001, %v1523_v17  ;;  %v1525_v11 = vmul.f32 %v2226_v10, %v3170_v14 }
 0x367   :  { %v2230_v12 = vpop.eup %2229  ;;  %1655 = vst [vmem:[%s3302_s6 + $0xa8] sm:$0xff] %v1623_v49  ;;  %v1624_v54 = vmul.f32 %v2228_v22, %v2812_v18  ;;  %v1536_v18 = vand.u32 2147483648, %v3184_v52 }
 0x368   :  { %v2232_v31 = vpop.eup %2231  ;;  %2243 = vrcp.f32 %v1567_v8  ;;  %v1527_v1 = vsel %vm1526_vm13, %v3170_v14, %v1525_v11  ;;  %v1532_v56 = vmul.f32 %v2230_v12, %v3184_v52 }
 0x369   :  { %1656 = vst [vmem:[%s3302_s6 + $0xb0] sm:$0xff] %v1624_v54  ;;  %v1625_v60 = vmul.f32 %v2232_v31, %v2809_v16  ;;  %v1530_v53 = vsel %vm1528_vm14, %v1529_v27, %v1527_v1 }
 0x36a   :  { %v2234_v29 = vpop.eup %2233  ;;  %v1568_v39 = vadd.f32 0.001, %v1530_v53  ;;  %v1534_v15 = vsel %vm1533_vm15, %v3184_v52, %v1532_v56 }
 0x36b   :  { %1657 = vst [vmem:[%s3302_s6 + $0xb8] sm:$0xff] %v1625_v60  ;;  %v1626_v14 = vmul.f32 %v2234_v29, %v2822_v26  ;;  %v1537_v44 = vsel %vm1535_vm0, %v1536_v18, %v1534_v15 }
 0x36c   :  { %2245 = vrcp.f32 %v1568_v39  ;;  %v1569_v16 = vadd.f32 0.001, %v1537_v44  ;;  %v2236_v59 = vpop.eup %2235 }
 0x36d   :  { %1658 = vst [vmem:[%s3302_s6 + $0xc0] sm:$0xff] %v1626_v14  ;;  %v2238_v38 = vpop.eup %2237  ;;  %v1627_v28 = vmul.f32 %v2236_v59, %v2819_v25 }
 0x36e   :  { %2247 = vrcp.f32 %v1569_v16  ;;  %v1628_v52 = vmul.f32 %v2238_v38, %v2832_v36 }
 0x36f   :  { %1659 = vst [vmem:[%s3302_s6 + $0xc8] sm:$0xff] %v1627_v28 }
 0x370   :  { %v2240_v55 = vpop.eup %2239  ;;  %1660 = vst [vmem:[%s3302_s6 + $0xd0] sm:$0xff] %v1628_v52 }
 0x371   :  { %v1629_v26 = vmul.f32 %v2240_v55, %v2829_v33  ;;  %v2242_v42 = vpop.eup %2241 }
 0x372   :  { %v1630_v25 = vmul.f32 %v2242_v42, %v2842_v2 }
 0x373   :  { %1661 = vst [vmem:[%s3302_s6 + $0xd8] sm:$0xff] %v1629_v26 }
 0x374   :  { %1662 = vst [vmem:[%s3302_s6 + $0xe0] sm:$0xff] %v1630_v25 }
 0x375   :  { %v2244_v5 = vpop.eup %2243 }
 0x376   :  { %v1631_v36 = vmul.f32 %v2244_v5, %v2839_v0 }
 0x378   :  { %1663 = vst [vmem:[%s3302_s6 + $0xe8] sm:$0xff] %v1631_v36 }
 0x379   :  { %v2246_v32 = vpop.eup %2245 }
 0x37a   :  { %v1632_v33 = vmul.f32 %v2246_v32, %v2852_v51 }
 0x37b   :  { %v2248_v46 = vpop.eup %2247 }
 0x37c   :  { %1664 = vst [vmem:[%s3302_s6 + $0xf0] sm:$0xff] %v1632_v33  ;;  %v1633_v2 = vmul.f32 %v2248_v46, %v2849_v48 }
 0x37e   :  { %1665 = vst [vmem:[%s3302_s6 + $0xf8] sm:$0xff] %v1633_v2 }
 0x37f   :  { %1670 = vsyncpa [#allocation8], 1 }

</bundles_post_ra>
